<compile_context>
chip_gen: v6e
topology: v6e:2x2x1
jax: 0.10.0
libtpu: 0.0.40
codegen_flags: <defaults>
</compile_context>

<pallas_src>
import jax
import jax.numpy as jnp
from jax import lax
from jax.experimental import pallas as pl
from jax.experimental.pallas import tpu as pltpu

# ---- small, TPU-friendly problem sizes ----
B, T, D = 2, 8, 128          # batch, seq_len, embed_dim (hidden_size)
NH, HD = 4, D // 4           # num_attention_heads, head_dim
F = 256                      # ffn_dim
BT = B * T
TF = 128                     # FFN tile width (grid axis); must equal D for bias packing
NKF = F // TF                # number of FFN tiles == grid length
EPS = 1e-5                   # nn.LayerNorm default eps
SCALING = HD ** -0.5
FMIN = float(jnp.finfo(jnp.float32).min)

assert TF == D and F % TF == 0

# row layout of the packed small-vector slab (one DMA descriptor for all of them)
_R_LN1W, _R_LN1B, _R_LN2W, _R_LN2B, _R_BO, _R_B2 = 0, 1, 2, 3, 4, 5
_R_BQ, _R_BK, _R_BV = 6, 7, 8
_R_B1 = 9                    # rows 9 .. 9 + NKF - 1 hold the fc1 bias tiles
NVEC = _R_B1 + NKF


def _layer_norm(x, w, b):
    mu = jnp.mean(x, axis=-1, keepdims=True)
    var = jnp.mean((x - mu) ** 2, axis=-1, keepdims=True)
    return (x - mu) * lax.rsqrt(var + EPS) * w + b


def decoder_layer_kernel(x_ref, mask_ref, wattn_ref, vec_ref, w1_ref, w2_ref,
                         out_ref, hn2_ref):
    """Grid over FFN tiles; attention + residual + LN2 run once at step 0."""
    kf = pl.program_id(0)

    @pl.when(kf == 0)
    def _attention_block():
        x = x_ref[...]                                   # (BT, D) f32
        vec = vec_ref[...]                               # (NVEC, D) f32
        ln1w, ln1b = vec[_R_LN1W:_R_LN1W + 1], vec[_R_LN1B:_R_LN1B + 1]
        ln2w, ln2b = vec[_R_LN2W:_R_LN2W + 1], vec[_R_LN2B:_R_LN2B + 1]
        bo, b2 = vec[_R_BO:_R_BO + 1], vec[_R_B2:_R_B2 + 1]
        bq, bk, bv = vec[_R_BQ:_R_BQ + 1], vec[_R_BK:_R_BK + 1], vec[_R_BV:_R_BV + 1]

        wattn = wattn_ref[...]                           # (D, 4D) bf16
        wqkv = wattn[:, :3 * D]                          # lane-tile-aligned slices
        wo = wattn[:, 3 * D:]

        # ---- self_attn_layer_norm (pre-attention, f32) ----
        hn = _layer_norm(x, ln1w, ln1b)

        # ---- fused q/k/v projection: one bf16 (BT,D)@(D,3D), f32 accumulation ----
        qkv = jnp.dot(hn.astype(jnp.bfloat16), wqkv,
                      preferred_element_type=jnp.float32)            # (BT, 3D) f32
        q3 = ((qkv[:, :D] + bq) * SCALING).reshape(B, T, D)          # torch order:
        k3 = (qkv[:, D:2 * D] + bk).reshape(B, T, D)                 # scale after bias
        v3 = (qkv[:, 2 * D:] + bv).reshape(B, T, D)

        def split_heads(t3):                             # (B,T,D) -> (NH*B, T, HD)
            return jnp.stack(
                [t3[:, :, h * HD:(h + 1) * HD] for h in range(NH)],
                axis=0).reshape(NH * B, T, HD)

        qh = split_heads(q3).astype(jnp.bfloat16)
        kh = split_heads(k3).astype(jnp.bfloat16)
        vh = split_heads(v3).astype(jnp.bfloat16)

        # ---- one batched score matmul + one shared softmax over all heads ----
        s = jnp.einsum('xtd,xsd->xts', qh, kh,
                       preferred_element_type=jnp.float32)           # (NH*B, T, T)
        s = s.reshape(NH, B, T, T) + mask_ref[...][None]
        # NOTE: torch's clamp to finfo.min is a no-op for the finite -1e9 mask -> elided
        s = s - jnp.max(s, axis=-1, keepdims=True)
        p = jnp.exp(s)
        p = p / jnp.sum(p, axis=-1, keepdims=True)                   # exact reciprocal
        p = p.reshape(NH * B, T, T).astype(jnp.bfloat16)

        ctx = jnp.einsum('xts,xsd->xtd', p, vh,
                         preferred_element_type=jnp.float32)         # (NH*B, T, HD)
        ctx = ctx.reshape(NH, B, T, HD)
        ctx = jnp.concatenate(
            [ctx[h].reshape(BT, HD) for h in range(NH)], axis=-1)    # (BT, D)

        # ---- single K=D out_proj matmul, then first residual ----
        attn = jnp.dot(ctx.astype(jnp.bfloat16), wo,
                       preferred_element_type=jnp.float32)
        h1 = x + attn + bo

        # ---- final_layer_norm, stash activations, seed the output accumulator ----
        hn2_ref[...] = _layer_norm(h1, ln2w, ln2b).astype(jnp.bfloat16)
        out_ref[...] = h1 + b2                       # residual + fc2 bias

    # ---- FFN partial product for this F tile (runs every grid step) ----
    ff = jnp.dot(hn2_ref[...], w1_ref[...], preferred_element_type=jnp.float32)
    ff = ff + vec_ref[pl.ds(_R_B1 + kf, 1), :]       # fc1 bias tile
    ff = jnp.maximum(ff, 0.0).astype(jnp.bfloat16)   # OPT activation_fn = relu
    out_ref[...] += jnp.dot(ff, w2_ref[...], preferred_element_type=jnp.float32)


@jax.jit
def opt_decoder_layer(hidden, mask, params):
    """hidden: (B, T, D) f32; mask: (B, 1, T, T) f32 additive mask."""
    (ln1w, ln1b, wq, bq, wk, bk, wv, bv, wo, bo,
     ln2w, ln2b, w1, b1, w2, b2) = params

    # Host-side parameter fusion + bf16 weight casts (halves weight DMA bytes).
    wattn = jnp.concatenate([wq, wk, wv, wo], axis=1).astype(jnp.bfloat16)  # (D, 4D)
    w1b = w1.astype(jnp.bfloat16)                                           # (D, F)
    w2b = w2.astype(jnp.bfloat16)                                           # (F, D)
    vec = jnp.concatenate(
        [ln1w, ln1b, ln2w, ln2b, bo, b2, bq, bk, bv, b1.reshape(NKF, TF)],
        axis=0).astype(jnp.float32)                                         # (NVEC, D)

    x2d = hidden.reshape(BT, D)          # fold batch into matmul rows
    mask3 = mask.reshape(B, T, T)        # drop the broadcast head dim

    flops = (2 * BT * D * 3 * D          # fused qkv
             + 4 * NH * B * T * T * HD   # scores + ctx
             + 2 * BT * D * D            # out_proj
             + 4 * BT * D * F)           # fc1 + fc2
    transcendentals = NH * B * T * T + 2 * BT
    bytes_accessed = (4 * (x2d.size + mask3.size + vec.size + BT * D)       # f32
                      + 2 * (wattn.size + w1b.size + w2b.size))             # bf16

    out2d = pl.pallas_call(
        decoder_layer_kernel,
        out_shape=jax.ShapeDtypeStruct((BT, D), jnp.float32),
        grid_spec=pltpu.PrefetchScalarGridSpec(
            num_scalar_prefetch=0,
            grid=(NKF,),                                     # FFN-tile axis: fc1/fc2
            in_specs=[                                       # tiles of step k+1 DMA
                pl.BlockSpec((BT, D), lambda kf: (0, 0)),    # during step k compute
                pl.BlockSpec((B, T, T), lambda kf: (0, 0, 0)),
                pl.BlockSpec((D, 4 * D), lambda kf: (0, 0)),   # qkv + out_proj slab
                pl.BlockSpec((NVEC, D), lambda kf: (0, 0)),    # LN/bias slab
                pl.BlockSpec((D, TF), lambda kf: (0, kf)),     # fc1 weight tile
                pl.BlockSpec((TF, D), lambda kf: (kf, 0)),     # fc2 weight tile
            ],
            out_specs=pl.BlockSpec((BT, D), lambda kf: (0, 0)),  # resident accumulator
            scratch_shapes=[pltpu.VMEM((BT, D), jnp.bfloat16)],  # post-LN2 activations
        ),
        compiler_params=pltpu.CompilerParams(
            dimension_semantics=("arbitrary",)),
        cost_estimate=pl.CostEstimate(
            flops=flops, transcendentals=transcendentals,
            bytes_accessed=bytes_accessed),
        input_output_aliases={0: 0},
    )(x2d, mask3, wattn, vec, w1b, w2b)
    return out2d.reshape(B, T, D)


# ---------------- pure-JAX f32 reference (mirrors the PyTorch forward) ----------------
def reference_forward(hidden, mask, params):
    (ln1w, ln1b, wq, bq, wk, bk, wv, bv, wo, bo,
     ln2w, ln2b, w1, b1, w2, b2) = params
    residual = hidden
    h = _layer_norm(hidden, ln1w[0], ln1b[0])
    q = (h @ wq + bq[0]) * SCALING
    k = h @ wk + bk[0]
    v = h @ wv + bv[0]
    qh = q.reshape(B, T, NH, HD).transpose(0, 2, 1, 3)
    kh = k.reshape(B, T, NH, HD).transpose(0, 2, 1, 3)
    vh = v.reshape(B, T, NH, HD).transpose(0, 2, 1, 3)
    scores = jnp.einsum('bhtd,bhsd->bhts', qh, kh) + mask
    scores = jnp.maximum(scores, FMIN)
    p = jax.nn.softmax(scores, axis=-1)
    ctx = jnp.einsum('bhts,bhsd->bhtd', p, vh).transpose(0, 2, 1, 3).reshape(B, T, D)
    attn_out = ctx @ wo + bo[0]
    h = residual + attn_out
    residual = h
    h = _layer_norm(h, ln2w[0], ln2b[0])
    h = jnp.maximum(h @ w1 + b1[0], 0.0)
    h = h @ w2 + b2[0]
    return residual + h


if __name__ == "__main__":
    key = jax.random.PRNGKey(0)
    keys = jax.random.split(key, 16)

    def rnd(k, shape, scale=0.05):
        return jax.random.normal(k, shape, dtype=jnp.float32) * scale

    params = (
        1.0 + rnd(keys[0], (1, D)),  rnd(keys[1], (1, D)),    # ln1 w, b
        rnd(keys[2], (D, D)),        rnd(keys[3], (1, D)),    # q_proj W^T, b
        rnd(keys[4], (D, D)),        rnd(keys[5], (1, D)),    # k_proj
        rnd(keys[6], (D, D)),        rnd(keys[7], (1, D)),    # v_proj
        rnd(keys[8], (D, D)),        rnd(keys[9], (1, D)),    # out_proj
        1.0 + rnd(keys[10], (1, D)), rnd(keys[11], (1, D)),   # ln2 w, b
        rnd(keys[12], (D, F)),       rnd(keys[13], (1, F)),   # fc1
        rnd(keys[14], (F, D)),       rnd(keys[15], (1, D)),   # fc2
    )

    kin = jax.random.split(jax.random.PRNGKey(1), 2)
    hidden = jax.random.normal(kin[0], (B, T, D), dtype=jnp.float32)
    # causal additive mask (future positions get a large negative value)
    causal = jnp.tril(jnp.ones((T, T), dtype=jnp.float32))
    mask = jnp.where(causal == 1.0, 0.0, -1e9).astype(jnp.float32)
    mask = jnp.broadcast_to(mask[None, None], (B, 1, T, T))

    out = opt_decoder_layer(hidden, mask, params)
    out = jax.block_until_ready(out)

    ref = reference_forward(hidden, mask, params)
    assert out.shape == (B, T, D)
    # tolerance covers bf16 matmul-operand rounding (f32 accumulation, f32 reference)
    err = float(jnp.max(jnp.abs(out - ref)))
    assert jnp.allclose(out, ref, rtol=3e-2, atol=3e-2), err

    print("KERNEL_OK")
</pallas_src>

<mosaic_0001>
module attributes {stable_mosaic.version = 11 : i64} {
  func.func @decoder_layer_kernel(%arg0: i32, %arg1: memref<16x128xf32, #tpu.memory_space<vmem>>, %arg2: memref<2x8x8xf32, #tpu.memory_space<vmem>>, %arg3: memref<128x512xbf16, #tpu.memory_space<vmem>>, %arg4: memref<11x128xf32, #tpu.memory_space<vmem>>, %arg5: memref<128x128xbf16, #tpu.memory_space<vmem>>, %arg6: memref<128x128xbf16, #tpu.memory_space<vmem>>, %arg7: memref<16x128xf32, #tpu.memory_space<vmem>>, %arg8: memref<16x128xbf16, #tpu.memory_space<vmem>>) attributes {dimension_semantics = [#tpu.dimension_semantics<arbitrary>], iteration_bounds = array<i64: 2>, scalar_prefetch = 0 : i64, scratch_operands = 1 : i64, tpu.core_type = #tpu.core_type<tc>, window_params = [{pipeline_mode = #tpu.pipeline_mode<synchronous>, transform_indices = @transform_0, window_bounds = array<i64: 16, 128>}, {pipeline_mode = #tpu.pipeline_mode<synchronous>, transform_indices = @transform_1, window_bounds = array<i64: 2, 8, 8>}, {pipeline_mode = #tpu.pipeline_mode<synchronous>, transform_indices = @transform_2, window_bounds = array<i64: 128, 512>}, {pipeline_mode = #tpu.pipeline_mode<synchronous>, transform_indices = @transform_3, window_bounds = array<i64: 11, 128>}, {transform_indices = @transform_4, window_bounds = array<i64: 128, 128>}, {transform_indices = @transform_5, window_bounds = array<i64: 128, 128>}, {pipeline_mode = #tpu.pipeline_mode<synchronous>, transform_indices = @transform_6, window_bounds = array<i64: 16, 128>}]} {
    %c0_i32 = arith.constant 0 : i32
    %0 = arith.cmpi eq, %arg0, %c0_i32 : i32
    %1 = arith.extui %0 : i1 to i32
    %c0_i32_0 = arith.constant 0 : i32
    %2 = arith.cmpi ne, %1, %c0_i32_0 : i32
    scf.if %2 {
      %c0_13 = arith.constant 0 : index
      %c0_14 = arith.constant 0 : index
      %19 = vector.load %arg1[%c0_13, %c0_14] : memref<16x128xf32, #tpu.memory_space<vmem>>, vector<16x128xf32>
      %c0_15 = arith.constant 0 : index
      %c0_16 = arith.constant 0 : index
      %20 = vector.load %arg4[%c0_15, %c0_16] : memref<11x128xf32, #tpu.memory_space<vmem>>, vector<11x128xf32>
      %21 = vector.extract_strided_slice %20 {offsets = [0, 0], sizes = [1, 128], strides = [1, 1]} : vector<11x128xf32> to vector<1x128xf32>
      %22 = vector.extract_strided_slice %20 {offsets = [1, 0], sizes = [1, 128], strides = [1, 1]} : vector<11x128xf32> to vector<1x128xf32>
      %23 = vector.extract_strided_slice %20 {offsets = [2, 0], sizes = [1, 128], strides = [1, 1]} : vector<11x128xf32> to vector<1x128xf32>
      %24 = vector.extract_strided_slice %20 {offsets = [3, 0], sizes = [1, 128], strides = [1, 1]} : vector<11x128xf32> to vector<1x128xf32>
      %25 = vector.extract_strided_slice %20 {offsets = [4, 0], sizes = [1, 128], strides = [1, 1]} : vector<11x128xf32> to vector<1x128xf32>
      %26 = vector.extract_strided_slice %20 {offsets = [5, 0], sizes = [1, 128], strides = [1, 1]} : vector<11x128xf32> to vector<1x128xf32>
      %27 = vector.extract_strided_slice %20 {offsets = [6, 0], sizes = [1, 128], strides = [1, 1]} : vector<11x128xf32> to vector<1x128xf32>
      %28 = vector.extract_strided_slice %20 {offsets = [7, 0], sizes = [1, 128], strides = [1, 1]} : vector<11x128xf32> to vector<1x128xf32>
      %29 = vector.extract_strided_slice %20 {offsets = [8, 0], sizes = [1, 128], strides = [1, 1]} : vector<11x128xf32> to vector<1x128xf32>
      %c0_17 = arith.constant 0 : index
      %c0_18 = arith.constant 0 : index
      %30 = vector.load %arg3[%c0_17, %c0_18] : memref<128x512xbf16, #tpu.memory_space<vmem>>, vector<128x512xbf16>
      %31 = vector.extract_strided_slice %30 {offsets = [0, 0], sizes = [128, 384], strides = [1, 1]} : vector<128x512xbf16> to vector<128x384xbf16>
      %32 = vector.extract_strided_slice %30 {offsets = [0, 384], sizes = [128, 128], strides = [1, 1]} : vector<128x512xbf16> to vector<128x128xbf16>
      %cst_19 = arith.constant dense<0.000000e+00> : vector<16xf32>
      %33 = vector.multi_reduction <add>, %19, %cst_19 [1] : vector<16x128xf32> to vector<16xf32>
      %34 = vector.shape_cast %33 : vector<16xf32> to vector<16x1xf32>
      %cst_20 = arith.constant 1.280000e+02 : f32
      %35 = vector.broadcast %cst_20 : f32 to vector<16x1xf32>
      %36 = arith.divf %34, %35 : vector<16x1xf32>
      %37 = vector.broadcast %36 : vector<16x1xf32> to vector<16x128xf32>
      %38 = arith.subf %19, %37 : vector<16x128xf32>
      %39 = arith.mulf %38, %38 : vector<16x128xf32>
      %cst_21 = arith.constant dense<0.000000e+00> : vector<16xf32>
      %40 = vector.multi_reduction <add>, %39, %cst_21 [1] : vector<16x128xf32> to vector<16xf32>
      %41 = vector.shape_cast %40 : vector<16xf32> to vector<16x1xf32>
      %cst_22 = arith.constant 1.280000e+02 : f32
      %42 = vector.broadcast %cst_22 : f32 to vector<16x1xf32>
      %43 = arith.divf %41, %42 : vector<16x1xf32>
      %44 = vector.broadcast %36 : vector<16x1xf32> to vector<16x128xf32>
      %45 = arith.subf %19, %44 : vector<16x128xf32>
      %cst_23 = arith.constant 9.99999974E-6 : f32
      %46 = vector.broadcast %cst_23 : f32 to vector<16x1xf32>
      %47 = arith.addf %43, %46 : vector<16x1xf32>
      %48 = math.rsqrt %47 : vector<16x1xf32>
      %49 = vector.broadcast %48 : vector<16x1xf32> to vector<16x128xf32>
      %50 = arith.mulf %45, %49 : vector<16x128xf32>
      %51 = vector.broadcast %21 : vector<1x128xf32> to vector<16x128xf32>
      %52 = arith.mulf %50, %51 : vector<16x128xf32>
      %53 = vector.broadcast %22 : vector<1x128xf32> to vector<16x128xf32>
      %54 = arith.addf %52, %53 : vector<16x128xf32>
      %55 = arith.truncf %54 : vector<16x128xf32> to vector<16x128xbf16>
      %cst_24 = arith.constant dense<0.000000e+00> : vector<16x384xf32>
      %56 = tpu.matmul %55, %31, %cst_24 {dimension_numbers = #tpu.dot_dimension_numbers<[1], [0], [0], [1], [0, 0, 1, 1], [], []>} : vector<16x128xbf16>, vector<128x384xbf16>, vector<16x384xf32> -> vector<16x384xf32>
      %57 = vector.extract_strided_slice %56 {offsets = [0, 0], sizes = [16, 128], strides = [1, 1]} : vector<16x384xf32> to vector<16x128xf32>
      %58 = vector.broadcast %27 : vector<1x128xf32> to vector<16x128xf32>
      %59 = arith.addf %57, %58 : vector<16x128xf32>
      %cst_25 = arith.constant 0.176776692 : f32
      %60 = vector.broadcast %cst_25 : f32 to vector<16x128xf32>
      %61 = arith.mulf %59, %60 : vector<16x128xf32>
      %62 = vector.shape_cast %61 : vector<16x128xf32> to vector<2x8x128xf32>
      %63 = vector.extract_strided_slice %56 {offsets = [0, 128], sizes = [16, 128], strides = [1, 1]} : vector<16x384xf32> to vector<16x128xf32>
      %64 = vector.broadcast %28 : vector<1x128xf32> to vector<16x128xf32>
      %65 = arith.addf %63, %64 : vector<16x128xf32>
      %66 = vector.shape_cast %65 : vector<16x128xf32> to vector<2x8x128xf32>
      %67 = vector.extract_strided_slice %56 {offsets = [0, 256], sizes = [16, 128], strides = [1, 1]} : vector<16x384xf32> to vector<16x128xf32>
      %68 = vector.broadcast %29 : vector<1x128xf32> to vector<16x128xf32>
      %69 = arith.addf %67, %68 : vector<16x128xf32>
      %70 = vector.shape_cast %69 : vector<16x128xf32> to vector<2x8x128xf32>
      %71 = vector.extract_strided_slice %62 {offsets = [0, 0, 0], sizes = [2, 8, 32], strides = [1, 1, 1]} : vector<2x8x128xf32> to vector<2x8x32xf32>
      %72 = vector.extract_strided_slice %62 {offsets = [0, 0, 32], sizes = [2, 8, 32], strides = [1, 1, 1]} : vector<2x8x128xf32> to vector<2x8x32xf32>
      %73 = vector.extract_strided_slice %62 {offsets = [0, 0, 64], sizes = [2, 8, 32], strides = [1, 1, 1]} : vector<2x8x128xf32> to vector<2x8x32xf32>
      %74 = vector.extract_strided_slice %62 {offsets = [0, 0, 96], sizes = [2, 8, 32], strides = [1, 1, 1]} : vector<2x8x128xf32> to vector<2x8x32xf32>
      %75 = vector.shape_cast %71 : vector<2x8x32xf32> to vector<1x2x8x32xf32>
      %76 = vector.shape_cast %72 : vector<2x8x32xf32> to vector<1x2x8x32xf32>
      %77 = vector.shape_cast %73 : vector<2x8x32xf32> to vector<1x2x8x32xf32>
      %78 = vector.shape_cast %74 : vector<2x8x32xf32> to vector<1x2x8x32xf32>
      %79 = tpu.concatenate %75, %76, %77, %78 in 0 : vector<1x2x8x32xf32>, vector<1x2x8x32xf32>, vector<1x2x8x32xf32>, vector<1x2x8x32xf32> -> vector<4x2x8x32xf32>
      %80 = vector.shape_cast %79 : vector<4x2x8x32xf32> to vector<8x8x32xf32>
      %81 = arith.truncf %80 : vector<8x8x32xf32> to vector<8x8x32xbf16>
      %82 = vector.extract_strided_slice %66 {offsets = [0, 0, 0], sizes = [2, 8, 32], strides = [1, 1, 1]} : vector<2x8x128xf32> to vector<2x8x32xf32>
      %83 = vector.extract_strided_slice %66 {offsets = [0, 0, 32], sizes = [2, 8, 32], strides = [1, 1, 1]} : vector<2x8x128xf32> to vector<2x8x32xf32>
      %84 = vector.extract_strided_slice %66 {offsets = [0, 0, 64], sizes = [2, 8, 32], strides = [1, 1, 1]} : vector<2x8x128xf32> to vector<2x8x32xf32>
      %85 = vector.extract_strided_slice %66 {offsets = [0, 0, 96], sizes = [2, 8, 32], strides = [1, 1, 1]} : vector<2x8x128xf32> to vector<2x8x32xf32>
      %86 = vector.shape_cast %82 : vector<2x8x32xf32> to vector<1x2x8x32xf32>
      %87 = vector.shape_cast %83 : vector<2x8x32xf32> to vector<1x2x8x32xf32>
      %88 = vector.shape_cast %84 : vector<2x8x32xf32> to vector<1x2x8x32xf32>
      %89 = vector.shape_cast %85 : vector<2x8x32xf32> to vector<1x2x8x32xf32>
      %90 = tpu.concatenate %86, %87, %88, %89 in 0 : vector<1x2x8x32xf32>, vector<1x2x8x32xf32>, vector<1x2x8x32xf32>, vector<1x2x8x32xf32> -> vector<4x2x8x32xf32>
      %91 = vector.shape_cast %90 : vector<4x2x8x32xf32> to vector<8x8x32xf32>
      %92 = arith.truncf %91 : vector<8x8x32xf32> to vector<8x8x32xbf16>
      %93 = vector.extract_strided_slice %70 {offsets = [0, 0, 0], sizes = [2, 8, 32], strides = [1, 1, 1]} : vector<2x8x128xf32> to vector<2x8x32xf32>
      %94 = vector.extract_strided_slice %70 {offsets = [0, 0, 32], sizes = [2, 8, 32], strides = [1, 1, 1]} : vector<2x8x128xf32> to vector<2x8x32xf32>
      %95 = vector.extract_strided_slice %70 {offsets = [0, 0, 64], sizes = [2, 8, 32], strides = [1, 1, 1]} : vector<2x8x128xf32> to vector<2x8x32xf32>
      %96 = vector.extract_strided_slice %70 {offsets = [0, 0, 96], sizes = [2, 8, 32], strides = [1, 1, 1]} : vector<2x8x128xf32> to vector<2x8x32xf32>
      %97 = vector.shape_cast %93 : vector<2x8x32xf32> to vector<1x2x8x32xf32>
      %98 = vector.shape_cast %94 : vector<2x8x32xf32> to vector<1x2x8x32xf32>
      %99 = vector.shape_cast %95 : vector<2x8x32xf32> to vector<1x2x8x32xf32>
      %100 = vector.shape_cast %96 : vector<2x8x32xf32> to vector<1x2x8x32xf32>
      %101 = tpu.concatenate %97, %98, %99, %100 in 0 : vector<1x2x8x32xf32>, vector<1x2x8x32xf32>, vector<1x2x8x32xf32>, vector<1x2x8x32xf32> -> vector<4x2x8x32xf32>
      %102 = vector.shape_cast %101 : vector<4x2x8x32xf32> to vector<8x8x32xf32>
      %103 = arith.truncf %102 : vector<8x8x32xf32> to vector<8x8x32xbf16>
      "tpu.trace_start"() <{level = 10 : i32, message = "xtd,xsd->xts"}> : () -> ()
      %cst_26 = arith.constant dense<0.000000e+00> : vector<8x8x8xf32>
      %104 = tpu.matmul %81, %92, %cst_26 {dimension_numbers = #tpu.dot_dimension_numbers<[2], [2], [1], [1], [0, 0, 0, 1, 1, 1], [0], [0]>} : vector<8x8x32xbf16>, vector<8x8x32xbf16>, vector<8x8x8xf32> -> vector<8x8x8xf32>
      "tpu.trace_stop"() : () -> ()
      %105 = vector.shape_cast %104 : vector<8x8x8xf32> to vector<4x2x8x8xf32>
      %c0_27 = arith.constant 0 : index
      %c0_28 = arith.constant 0 : index
      %c0_29 = arith.constant 0 : index
      %106 = vector.load %arg2[%c0_27, %c0_28, %c0_29] : memref<2x8x8xf32, #tpu.memory_space<vmem>>, vector<2x8x8xf32>
      %107 = vector.shape_cast %106 : vector<2x8x8xf32> to vector<1x2x8x8xf32>
      %108 = vector.broadcast %107 : vector<1x2x8x8xf32> to vector<4x2x8x8xf32>
      %109 = arith.addf %105, %108 : vector<4x2x8x8xf32>
      %cst_30 = arith.constant dense<0xFF800000> : vector<4x2x8xf32>
      %110 = vector.multi_reduction <maximumf>, %109, %cst_30 [3] : vector<4x2x8x8xf32> to vector<4x2x8xf32>
      %111 = vector.shape_cast %110 : vector<4x2x8xf32> to vector<4x2x8x1xf32>
      %112 = vector.broadcast %111 : vector<4x2x8x1xf32> to vector<4x2x8x8xf32>
      %113 = arith.subf %109, %112 : vector<4x2x8x8xf32>
      %114 = math.exp %113 : vector<4x2x8x8xf32>
      %cst_31 = arith.constant dense<0.000000e+00> : vector<4x2x8xf32>
      %115 = vector.multi_reduction <add>, %114, %cst_31 [3] : vector<4x2x8x8xf32> to vector<4x2x8xf32>
      %116 = vector.shape_cast %115 : vector<4x2x8xf32> to vector<4x2x8x1xf32>
      %117 = vector.broadcast %116 : vector<4x2x8x1xf32> to vector<4x2x8x8xf32>
      %118 = arith.divf %114, %117 : vector<4x2x8x8xf32>
      %119 = vector.shape_cast %118 : vector<4x2x8x8xf32> to vector<8x8x8xf32>
      %120 = arith.truncf %119 : vector<8x8x8xf32> to vector<8x8x8xbf16>
      "tpu.trace_start"() <{level = 10 : i32, message = "xts,xsd->xtd"}> : () -> ()
      %cst_32 = arith.constant dense<0.000000e+00> : vector<8x8x32xf32>
      %121 = tpu.matmul %120, %103, %cst_32 {dimension_numbers = #tpu.dot_dimension_numbers<[2], [1], [1], [2], [0, 0, 0, 1, 1, 2], [0], [0]>} : vector<8x8x8xbf16>, vector<8x8x32xbf16>, vector<8x8x32xf32> -> vector<8x8x32xf32>
      "tpu.trace_stop"() : () -> ()
      %122 = vector.shape_cast %121 : vector<8x8x32xf32> to vector<4x2x8x32xf32>
      %123 = vector.extract_strided_slice %122 {offsets = [0, 0, 0, 0], sizes = [1, 2, 8, 32], strides = [1, 1, 1, 1]} : vector<4x2x8x32xf32> to vector<1x2x8x32xf32>
      %124 = vector.shape_cast %123 : vector<1x2x8x32xf32> to vector<2x8x32xf32>
      %125 = vector.shape_cast %124 : vector<2x8x32xf32> to vector<16x32xf32>
      %126 = vector.extract_strided_slice %122 {offsets = [1, 0, 0, 0], sizes = [1, 2, 8, 32], strides = [1, 1, 1, 1]} : vector<4x2x8x32xf32> to vector<1x2x8x32xf32>
      %127 = vector.shape_cast %126 : vector<1x2x8x32xf32> to vector<2x8x32xf32>
      %128 = vector.shape_cast %127 : vector<2x8x32xf32> to vector<16x32xf32>
      %129 = vector.extract_strided_slice %122 {offsets = [2, 0, 0, 0], sizes = [1, 2, 8, 32], strides = [1, 1, 1, 1]} : vector<4x2x8x32xf32> to vector<1x2x8x32xf32>
      %130 = vector.shape_cast %129 : vector<1x2x8x32xf32> to vector<2x8x32xf32>
      %131 = vector.shape_cast %130 : vector<2x8x32xf32> to vector<16x32xf32>
      %132 = vector.extract_strided_slice %122 {offsets = [3, 0, 0, 0], sizes = [1, 2, 8, 32], strides = [1, 1, 1, 1]} : vector<4x2x8x32xf32> to vector<1x2x8x32xf32>
      %133 = vector.shape_cast %132 : vector<1x2x8x32xf32> to vector<2x8x32xf32>
      %134 = vector.shape_cast %133 : vector<2x8x32xf32> to vector<16x32xf32>
      %135 = tpu.concatenate %125, %128, %131, %134 in 1 : vector<16x32xf32>, vector<16x32xf32>, vector<16x32xf32>, vector<16x32xf32> -> vector<16x128xf32>
      %136 = arith.truncf %135 : vector<16x128xf32> to vector<16x128xbf16>
      %cst_33 = arith.constant dense<0.000000e+00> : vector<16x128xf32>
      %137 = tpu.matmul %136, %32, %cst_33 {dimension_numbers = #tpu.dot_dimension_numbers<[1], [0], [0], [1], [0, 0, 1, 1], [], []>} : vector<16x128xbf16>, vector<128x128xbf16>, vector<16x128xf32> -> vector<16x128xf32>
      %138 = arith.addf %19, %137 : vector<16x128xf32>
      %139 = vector.broadcast %25 : vector<1x128xf32> to vector<16x128xf32>
      %140 = arith.addf %138, %139 : vector<16x128xf32>
      %cst_34 = arith.constant dense<0.000000e+00> : vector<16xf32>
      %141 = vector.multi_reduction <add>, %140, %cst_34 [1] : vector<16x128xf32> to vector<16xf32>
      %142 = vector.shape_cast %141 : vector<16xf32> to vector<16x1xf32>
      %cst_35 = arith.constant 1.280000e+02 : f32
      %143 = vector.broadcast %cst_35 : f32 to vector<16x1xf32>
      %144 = arith.divf %142, %143 : vector<16x1xf32>
      %145 = vector.broadcast %144 : vector<16x1xf32> to vector<16x128xf32>
      %146 = arith.subf %140, %145 : vector<16x128xf32>
      %147 = arith.mulf %146, %146 : vector<16x128xf32>
      %cst_36 = arith.constant dense<0.000000e+00> : vector<16xf32>
      %148 = vector.multi_reduction <add>, %147, %cst_36 [1] : vector<16x128xf32> to vector<16xf32>
      %149 = vector.shape_cast %148 : vector<16xf32> to vector<16x1xf32>
      %cst_37 = arith.constant 1.280000e+02 : f32
      %150 = vector.broadcast %cst_37 : f32 to vector<16x1xf32>
      %151 = arith.divf %149, %150 : vector<16x1xf32>
      %152 = vector.broadcast %144 : vector<16x1xf32> to vector<16x128xf32>
      %153 = arith.subf %140, %152 : vector<16x128xf32>
      %cst_38 = arith.constant 9.99999974E-6 : f32
      %154 = vector.broadcast %cst_38 : f32 to vector<16x1xf32>
      %155 = arith.addf %151, %154 : vector<16x1xf32>
      %156 = math.rsqrt %155 : vector<16x1xf32>
      %157 = vector.broadcast %156 : vector<16x1xf32> to vector<16x128xf32>
      %158 = arith.mulf %153, %157 : vector<16x128xf32>
      %159 = vector.broadcast %23 : vector<1x128xf32> to vector<16x128xf32>
      %160 = arith.mulf %158, %159 : vector<16x128xf32>
      %161 = vector.broadcast %24 : vector<1x128xf32> to vector<16x128xf32>
      %162 = arith.addf %160, %161 : vector<16x128xf32>
      %163 = arith.truncf %162 : vector<16x128xf32> to vector<16x128xbf16>
      %c0_39 = arith.constant 0 : index
      %c0_40 = arith.constant 0 : index
      %164 = vector.load %arg8[%c0_39, %c0_40] : memref<16x128xbf16, #tpu.memory_space<vmem>>, vector<16x128xbf16>
      tpu.vector_store %arg8[%c0_39, %c0_40], %163 {strides = array<i32>} : memref<16x128xbf16, #tpu.memory_space<vmem>>, vector<16x128xbf16>,
      %165 = vector.broadcast %26 : vector<1x128xf32> to vector<16x128xf32>
      %166 = arith.addf %140, %165 : vector<16x128xf32>
      %c0_41 = arith.constant 0 : index
      %c0_42 = arith.constant 0 : index
      %167 = vector.load %arg7[%c0_41, %c0_42] : memref<16x128xf32, #tpu.memory_space<vmem>>, vector<16x128xf32>
      tpu.vector_store %arg7[%c0_41, %c0_42], %166 {strides = array<i32>} : memref<16x128xf32, #tpu.memory_space<vmem>>, vector<16x128xf32>,
    } else {
    }
    %c0 = arith.constant 0 : index
    %c0_1 = arith.constant 0 : index
    %3 = vector.load %arg8[%c0, %c0_1] : memref<16x128xbf16, #tpu.memory_space<vmem>>, vector<16x128xbf16>
    %c0_2 = arith.constant 0 : index
    %c0_3 = arith.constant 0 : index
    %4 = vector.load %arg5[%c0_2, %c0_3] : memref<128x128xbf16, #tpu.memory_space<vmem>>, vector<128x128xbf16>
    %cst = arith.constant dense<0.000000e+00> : vector<16x128xf32>
    %5 = tpu.matmul %3, %4, %cst {dimension_numbers = #tpu.dot_dimension_numbers<[1], [0], [0], [1], [0, 0, 1, 1], [], []>} : vector<16x128xbf16>, vector<128x128xbf16>, vector<16x128xf32> -> vector<16x128xf32>
    %c9_i32 = arith.constant 9 : i32
    %6 = arith.addi %c9_i32, %arg0 : i32
    %7 = arith.index_cast %6 : i32 to index
    %c0_4 = arith.constant 0 : index
    %8 = vector.load %arg4[%7, %c0_4] : memref<11x128xf32, #tpu.memory_space<vmem>>, vector<1x128xf32>
    %9 = vector.broadcast %8 : vector<1x128xf32> to vector<16x128xf32>
    %10 = arith.addf %5, %9 : vector<16x128xf32>
    %cst_5 = arith.constant 0.000000e+00 : f32
    %11 = vector.broadcast %cst_5 : f32 to vector<16x128xf32>
    %12 = arith.maximumf %10, %11 : vector<16x128xf32>
    %13 = arith.truncf %12 : vector<16x128xf32> to vector<16x128xbf16>
    %c0_6 = arith.constant 0 : index
    %c0_7 = arith.constant 0 : index
    %14 = vector.load %arg7[%c0_6, %c0_7] : memref<16x128xf32, #tpu.memory_space<vmem>>, vector<16x128xf32>
    %c0_8 = arith.constant 0 : index
    %c0_9 = arith.constant 0 : index
    %15 = vector.load %arg6[%c0_8, %c0_9] : memref<128x128xbf16, #tpu.memory_space<vmem>>, vector<128x128xbf16>
    %cst_10 = arith.constant dense<0.000000e+00> : vector<16x128xf32>
    %16 = tpu.matmul %13, %15, %cst_10 {dimension_numbers = #tpu.dot_dimension_numbers<[1], [0], [0], [1], [0, 0, 1, 1], [], []>} : vector<16x128xbf16>, vector<128x128xbf16>, vector<16x128xf32> -> vector<16x128xf32>
    %17 = arith.addf %14, %16 : vector<16x128xf32>
    %c0_11 = arith.constant 0 : index
    %c0_12 = arith.constant 0 : index
    %18 = vector.load %arg7[%c0_11, %c0_12] : memref<16x128xf32, #tpu.memory_space<vmem>>, vector<16x128xf32>
    tpu.vector_store %arg7[%c0_11, %c0_12], %17 {strides = array<i32>} : memref<16x128xf32, #tpu.memory_space<vmem>>, vector<16x128xf32>,
    return
  }
  func.func @transform_0(%arg0: i32) -> (i32, i32) {
    %c0_i32 = arith.constant 0 : i32
    %c0_i32_0 = arith.constant 0 : i32
    %c0_i32_1 = arith.constant 0 : i32
    return %c0_i32, %c0_i32_0 : i32, i32
  }
  func.func @transform_1(%arg0: i32) -> (i32, i32, i32) {
    %c0_i32 = arith.constant 0 : i32
    %c0_i32_0 = arith.constant 0 : i32
    %c0_i32_1 = arith.constant 0 : i32
    %c0_i32_2 = arith.constant 0 : i32
    return %c0_i32, %c0_i32_0, %c0_i32_1 : i32, i32, i32
  }
  func.func @transform_2(%arg0: i32) -> (i32, i32) {
    %c0_i32 = arith.constant 0 : i32
    %c0_i32_0 = arith.constant 0 : i32
    %c0_i32_1 = arith.constant 0 : i32
    return %c0_i32, %c0_i32_0 : i32, i32
  }
  func.func @transform_3(%arg0: i32) -> (i32, i32) {
    %c0_i32 = arith.constant 0 : i32
    %c0_i32_0 = arith.constant 0 : i32
    %c0_i32_1 = arith.constant 0 : i32
    return %c0_i32, %c0_i32_0 : i32, i32
  }
  func.func @transform_4(%arg0: i32) -> (i32, i32) {
    %c0_i32 = arith.constant 0 : i32
    %c0_i32_0 = arith.constant 0 : i32
    return %c0_i32, %arg0 : i32, i32
  }
  func.func @transform_5(%arg0: i32) -> (i32, i32) {
    %c0_i32 = arith.constant 0 : i32
    %c0_i32_0 = arith.constant 0 : i32
    return %arg0, %c0_i32 : i32, i32
  }
  func.func @transform_6(%arg0: i32) -> (i32, i32) {
    %c0_i32 = arith.constant 0 : i32
    %c0_i32_0 = arith.constant 0 : i32
    %c0_i32_1 = arith.constant 0 : i32
    return %c0_i32, %c0_i32_0 : i32, i32
  }
}

</mosaic_0001>

<bundles_post_ra>
// kernel: opt_decoder_layer.1
= control target key start
LH: loop header
LB: loop body
LE: loop exit
PB: predicated region body
PF: predicated region fallthrough
CT: control target
= control target key end

     0   :  { %s2641_s21 = smov 0   ;;  %s2643_s22 = smov 0   ;;  %s3079_s0 = inlined_call_operand.vmem [shape: f32[16,128], index: 0, kind: input, shape index: {}, may-alias: {0,6}]   ;;  %s3080_s1 = inlined_call_operand.vmem [shape: f32[2,8,8], index: 1, kind: input, shape index: {}]   ;;  %s3081_s2 = inlined_call_operand.vmem [shape: bf16[128,512], index: 2, kind: input, shape index: {}]   ;;  %s3082_s3 = inlined_call_operand.vmem [shape: f32[11,128], index: 3, kind: input, shape index: {}]   ;;  %s3083_s4 = inlined_call_operand.vmem [shape: bf16[128,256], index: 4, kind: input, shape index: {}]   ;;  %s3084_s5 = inlined_call_operand.vmem [shape: bf16[256,128], index: 5, kind: input, shape index: {}]   ;;  %s3085_s6 = inlined_call_operand.vmem [shape: f32[16,128], index: 6, kind: output, shape index: {}, may-alias: {0,6}]  }
   0x1   :  { %s2645_s23 = smov 0  }
   0x2 LB: > { %s2657_s24 = sadd.s32 4294967295, %s2596_s23   ;;  %s2660_s25 = sadd.s32 1, %s2596_s23   ;;  %s2596_s23 = sphi %s2645_s23, %s3088_s23   ;;  %s2592_s22 = sphi %s2643_s22, %s3087_s22   ;;  %s2588_s21 = sphi %s2641_s21, %s3086_s21  }
   0x3   : > { %s104_s26 = ssub.s32 %s2596_s23, %s2660_s25  ;;  %s107_s27 = sadd.s32 1, %s2592_s22 }
   0x4   : > { %p105_p0 = scmp.eq.s32.totalorder %s104_s26, 0  ;;  %p114_p1 = scmp.ne.s32.totalorder %s2592_s22, %s2588_s21 }
   0x5   : > { %p115_p2 = scmp.eq.s32.totalorder %s2596_s23, 0  ;;  %p2050_p4 = scmp.ge.s32.totalorder %s2596_s23, 2 }
   0x6   : > { %s2669_s28 = scalar_select %p105_p0, %s2592_s22, %s107_s27  }
   0x7   : > { %p116_p3 = por %p115_p2, %p114_p1  ;;  %199 = sbr.rel (%p2050_p4) target bundleno = 26 (0x1a), region = 32 }
   0xc   : > { %202 = sbr.rel (!%p116_p3) target bundleno = 26 (0x1a), region = 36  ;;  %s204_s29 = sand.u32 (%p116_p3), 1, %s2592_s22  }
   0xd   : > { %s2052_s30 = sshll.u32 (%p116_p3), %s2596_s23, 2  ;;  %s2051_s7 = sshll.u32 (%p116_p3), %s204_s29, 6 }
   0xe   : > { %s2677_s10 = scalar_lea.vmem (%p116_p3), %s3083_s4, %s2052_s30  ;;  %s206_s11 = scalar_lea.vmem (%p116_p3), [#allocation3], %s2051_s7 }
   0xf   : > { %v225_v0 = vld [vmem:[%s2677_s10] sm:$0xf] (%p116_p3)  ;;  %v227_v1 = vld [vmem:[%s2677_s10 + $0x8] sm:$0xf] (%p116_p3)  ;;  %v229_v2 = vld [vmem:[%s2677_s10 + $0x10] sm:$0xf] (%p116_p3) }
  0x10   : > { %226 = vst [vmem:[%s206_s11] sm:$0xf] (%p116_p3), %v225_v0  ;;  %228 = vst [vmem:[%s206_s11 + $0x4] sm:$0xf] (%p116_p3), %v227_v1  ;;  %v231_v3 = vld [vmem:[%s2677_s10 + $0x18] sm:$0xf] (%p116_p3) }
  0x11   : > { %v233_v4 = vld [vmem:[%s2677_s10 + $0x20] sm:$0xf]  ;;  %230 = vst [vmem:[%s206_s11 + $0x8] sm:$0xf] %v229_v2  ;;  %232 = vst [vmem:[%s206_s11 + $0xc] sm:$0xf] %v231_v3 }
  0x12   : > { %234 = vst [vmem:[%s206_s11 + $0x10] sm:$0xf] %v233_v4  ;;  %v235_v5 = vld [vmem:[%s2677_s10 + $0x28] sm:$0xf]  ;;  %v237_v6 = vld [vmem:[%s2677_s10 + $0x30] sm:$0xf] }
  0x13   : > { %v239_v7 = vld [vmem:[%s2677_s10 + $0x38] sm:$0xf]  ;;  %236 = vst [vmem:[%s206_s11 + $0x14] sm:$0xf] %v235_v5  ;;  %238 = vst [vmem:[%s206_s11 + $0x18] sm:$0xf] %v237_v6 }
  0x14   : > { %240 = vst [vmem:[%s206_s11 + $0x1c] sm:$0xf] %v239_v7  ;;  %v241_v8 = vld [vmem:[%s2677_s10 + $0x40] sm:$0xf]  ;;  %v243_v9 = vld [vmem:[%s2677_s10 + $0x48] sm:$0xf] }
  0x15   : > { %v245_v10 = vld [vmem:[%s2677_s10 + $0x50] sm:$0xf]  ;;  %242 = vst [vmem:[%s206_s11 + $0x20] sm:$0xf] %v241_v8  ;;  %244 = vst [vmem:[%s206_s11 + $0x24] sm:$0xf] %v243_v9 }
  0x16   : > { %246 = vst [vmem:[%s206_s11 + $0x28] sm:$0xf] %v245_v10  ;;  %v247_v11 = vld [vmem:[%s2677_s10 + $0x58] sm:$0xf]  ;;  %v249_v12 = vld [vmem:[%s2677_s10 + $0x60] sm:$0xf] }
  0x17   : > { %v251_v13 = vld [vmem:[%s2677_s10 + $0x68] sm:$0xf]  ;;  %248 = vst [vmem:[%s206_s11 + $0x2c] sm:$0xf] %v247_v11  ;;  %250 = vst [vmem:[%s206_s11 + $0x30] sm:$0xf] %v249_v12 }
  0x18   : > { %252 = vst [vmem:[%s206_s11 + $0x34] sm:$0xf] %v251_v13  ;;  %v253_v14 = vld [vmem:[%s2677_s10 + $0x70] sm:$0xf]  ;;  %v255_v15 = vld [vmem:[%s2677_s10 + $0x78] sm:$0xf] }
  0x19   : > { %254 = vst [vmem:[%s206_s11 + $0x38] sm:$0xf] %v253_v14  ;;  %256 = vst [vmem:[%s206_s11 + $0x3c] sm:$0xf] %v255_v15 }
  0x1a PF: > { %p2053_p5 = scmp.ge.s32.totalorder %s2596_s23, 1  ;;  %p320_p6 = scmp.lt.s32.totalorder %s2596_s23, 3 }
  0x1c   : > { %p321_p7 = pnand %p2053_p5, %p320_p6 }
  0x1d   : > { %s327_s12 = sand.u32 (!%p321_p7), 1, %s2588_s21   ;;  %s2055_s13 = sshll.u32 (!%p321_p7), %s2657_s24, 4 }
  0x1e   : > { %324 = sbr.rel (%p321_p7) target bundleno = 2473 (0x9a9), region = 81  ;;  %s2054_s14 = sshll.u32 (!%p321_p7), %s327_s12, 6 }
  0x1f   : > { %p357_p8 = scmp.lt.s32.totalorder (!%p321_p7), %s2055_s13, 31  ;;  %s2704_s19 = scalar_lea.vmem (!%p321_p7), [#allocation3], %s2054_s14 }
  0x20   : > { %p2057_p9 = scmp.ne.s32.totalorder (!%p321_p7), %s2657_s24, 0 }
  0x23   : > { %s3090_s13 = smov (!%p357_p8, %s2055_s13), 31  ;;  %366 = sbr.rel (%p2057_p9) target bundleno = 2037 (0x7f5), region = 89 }
  0x24   : > { %s2056_s15 = sshll.u32 %s3090_s13, 2  ;;  %s2601_s21 = smov (!%p2057_p9), 96  }
  0x25   : > { %s2702_s18 = scalar_lea.vmem %s3084_s5, %s2056_s15  ;;  %s2602_s26 = smov (!%p2057_p9), 64  }
  0x26   : > { %s2603_s27 = smov (!%p2057_p9), 32  }
  0x28   : > { %v367_v16 = vld [vmem:[%s3079_s0] sm:$0xff]  ;;  %v368_v17 = vld [vmem:[%s3079_s0 + $0x8] sm:$0xff]  ;;  %v2598_v20 = vmov 0.0   ;;  %v2599_v46 = vmov 0   ;;  %vm2600_vm0 = vmmov 0   ;;  %v426_v58 = vlaneseq }
  0x29   : > { %403 = vadd.xlane.f32.xlu0 %v367_v16  ;;  %v2467_v18 = vld [vmem:[%s3081_s2 + $0xe4] ss:$16 sps:$4 sm:$0xff]   ;;  %v2469_v19 = vld [vmem:[%s3081_s2 + $0xe0] ss:$16 sps:$4 sm:$0xff]   ;;  %2204 = vmatprep.subr.bf16.mxu1 %v2598_v20  ;;  %v2470_v21 = vld [vmem:[%s3081_s2 + $0xe8] ss:$16 sps:$4 sm:$0xff]  }
  0x2a   : > { %567 = vmatprep.subr.bf16.mxu0 %v2467_v18  ;;  %2205 = vmatpush3.bf16.msra.mxu1 %v2470_v21  ;;  %v2473_v30 = vld [vmem:[%s3081_s2 + $0xc4] ss:$16 sps:$4 sm:$0xff]   ;;  %v2475_v31 = vld [vmem:[%s3081_s2 + $0xc0] ss:$16 sps:$4 sm:$0xff]   ;;  %v2476_v32 = vld [vmem:[%s3081_s2 + $0xc8] ss:$16 sps:$4 sm:$0xff]  }
  0x2b   : > { %568 = vmatpush1.bf16.msra.mxu0 %v2469_v19  ;;  %2206 = vmatprep.subr.bf16.mxu1 %v2598_v20  ;;  %v2479_v33 = vld [vmem:[%s3081_s2 + $0xa4] ss:$16 sps:$4 sm:$0xff]   ;;  %v2481_v34 = vld [vmem:[%s3081_s2 + $0xa0] ss:$16 sps:$4 sm:$0xff]   ;;  %v2482_v35 = vld [vmem:[%s3081_s2 + $0xa8] ss:$16 sps:$4 sm:$0xff]  }
  0x2c   : > { %569 = vmatprep.subr.bf16.mxu0 %v2473_v30  ;;  %v2485_v36 = vld [vmem:[%s3081_s2 + $0x84] ss:$16 sps:$4 sm:$0xff]   ;;  %v2487_v37 = vld [vmem:[%s3081_s2 + $0x80] ss:$16 sps:$4 sm:$0xff]   ;;  %v2488_v38 = vld [vmem:[%s3081_s2 + $0x88] ss:$16 sps:$4 sm:$0xff]   ;;  %599 = vmatprep.mubr.bf16.mxu0 %v2599_v46 }
  0x2d   : > { %405 = vadd.xlane.f32.xlu0 %v368_v17  ;;  %v2491_v39 = vld [vmem:[%s3081_s2 + $0x64] ss:$16 sps:$4 sm:$0xff]   ;;  %v2493_v40 = vld [vmem:[%s3081_s2 + $0x60] ss:$16 sps:$4 sm:$0xff]   ;;  %v2494_v41 = vld [vmem:[%s3081_s2 + $0x68] ss:$16 sps:$4 sm:$0xff]   ;;  %2220 = vmatprep.mubr.msk.bf16.mxu1 %vm2600_vm0, %v2598_v20 }
  0x2e   : > { %2207 = vmatpush3.bf16.msra.mxu1 %v2476_v32  ;;  %v2497_v42 = vld [vmem:[%s3081_s2 + $0x44] ss:$16 sps:$4 sm:$0xff]   ;;  %v2499_v43 = vld [vmem:[%s3081_s2 + $0x40] ss:$16 sps:$4 sm:$0xff]   ;;  %v2500_v44 = vld [vmem:[%s3081_s2 + $0x48] ss:$16 sps:$4 sm:$0xff]  }
  0x2f   : > { %570 = vmatpush1.bf16.msra.mxu0 %v2475_v31  ;;  %2208 = vmatprep.subr.bf16.mxu1 %v2598_v20  ;;  %v2503_v45 = vld [vmem:[%s3081_s2 + $0x24] ss:$16 sps:$4 sm:$0xff]   ;;  %v2505_v47 = vld [vmem:[%s3081_s2 + $0x20] ss:$16 sps:$4 sm:$0xff]   ;;  %v2506_v48 = vld [vmem:[%s3081_s2 + $0x28] ss:$16 sps:$4 sm:$0xff]  }
  0x30   : > { %571 = vmatprep.subr.bf16.mxu0 %v2479_v33  ;;  %v2509_v49 = vld [vmem:[%s3081_s2 + $0x4] ss:$16 sps:$4 sm:$0xff]   ;;  %v2511_v50 = vld [vmem:[%s3081_s2] ss:$16 sps:$4 sm:$0xff]   ;;  %v2512_v51 = vld [vmem:[%s3081_s2 + $0x8] ss:$16 sps:$4 sm:$0xff]  }
  0x31   : > { %v2805_v59 = vshrl.u32 %v426_v58, 7  ;;  %v2811_v61 = vld [vmem:[%s3082_s3] sm:$0xff]  ;;  %v370_v13 = vld [vmem:[%s3082_s3 + $0x8] sm:$0x7]  ;;  %vm755_vm1 = vcmask 261120   ;;  %vm1234_vm2 = vcmask 1043456  }
  0x32   : > { %2209 = vmatpush3.bf16.msra.mxu1 %v2482_v35  ;;  %vm1134_vm3 = vcmask 64512   ;;  %vm1626_vm4 = vcmask 523264   ;;  %vm1629_vm5 = vcmask 785408  }
  0x33   : > { %572 = vmatpush1.bf16.msra.mxu0 %v2481_v34  ;;  %2210 = vmatprep.subr.bf16.mxu1 %v2598_v20  ;;  %v428_v60 = vsub.s32 0, %v2805_v59  ;;  %v434_v1 = vsub.s32 1, %v2805_v59  ;;  %v653_v10 = vsub.s32 6, %v2805_v59  ;;  %v661_v11 = vsub.s32 7, %v2805_v59 }
  0x34   : > { %573 = vmatprep.subr.bf16.mxu0 %v2485_v36 }
  0x35   : > { %v429_v0 = vrot.slane %v2811_v61, %v428_v60  ;;  %v435_v5 = vrot.slane %v2811_v61, %v434_v1  ;;  %v654_v12 = vrot.slane %v2811_v61, %v653_v10  ;;  %v662_v14 = vrot.slane %v2811_v61, %v661_v11 }
  0x36   : > { %2211 = vmatpush3.bf16.msra.mxu1 %v2488_v38 }
  0x37   : > { %574 = vmatpush1.bf16.msra.mxu0 %v2487_v37  ;;  %2212 = vmatprep.subr.bf16.mxu1 %v2598_v20 }
  0x38   : > { %575 = vmatprep.subr.bf16.mxu0 %v2491_v39 }
  0x3a   : > { %2213 = vmatpush3.bf16.msra.mxu1 %v2494_v41 }
  0x3b   : > { %576 = vmatpush1.bf16.msra.mxu0 %v2493_v40  ;;  %2214 = vmatprep.subr.bf16.mxu1 %v2598_v20 }
  0x3c   : > { %577 = vmatprep.subr.bf16.mxu0 %v2497_v42 }
  0x3e   : > { %2215 = vmatpush3.bf16.msra.mxu1 %v2500_v44 }
  0x3f   : > { %578 = vmatpush1.bf16.msra.mxu0 %v2499_v43  ;;  %2216 = vmatprep.subr.bf16.mxu1 %v2598_v20 }
  0x40   : > { %579 = vmatprep.subr.bf16.mxu0 %v2503_v45 }
  0x42   : > { %2217 = vmatpush3.bf16.msra.mxu1 %v2506_v48 }
  0x43   : > { %580 = vmatpush1.bf16.msra.mxu0 %v2505_v47  ;;  %2218 = vmatprep.subr.bf16.mxu1 %v2598_v20 }
  0x44   : > { %581 = vmatprep.subr.bf16.mxu0 %v2509_v49 }
  0x46   : > { %2219 = vmatpush3.bf16.msra.mxu1 %v2512_v51 }
  0x47   : > { %582 = vmatpush1.bf16.msra.mxu0 %v2511_v50  ;;  %2224 = vmatprep.subr.bf16.mxu1 %v2598_v20 }
  0x48   : > { %2248 = vmatprep.subr.bf16.mxu0 %v2598_v20 }
  0xb2   : > { %v404_v22 = vpop.xlane.xlu0 %403 }
  0xb3   : > { %v408_v23 = vmul.f32 0.0078125, %v404_v22 }
  0xb5   : > { %v2724_v24 = vsub.f32 %v367_v16, %v408_v23 }
  0xb6   : > { %v406_v25 = vpop.xlane.xlu0 %405 }
  0xb7   : > { %v409_v26 = vmul.f32 0.0078125, %v406_v25  ;;  %v412_v27 = vmul.f32 %v2724_v24, %v2724_v24 }
  0xb9   : > { %v2728_v28 = vsub.f32 %v368_v17, %v409_v26  ;;  %414 = vadd.xlane.f32.xlu1 %v412_v27  ;;  %v668_v17 = vrot.slane %v370_v13, %v428_v60 }
  0xbb   : > { %v413_v29 = vmul.f32 %v2728_v28, %v2728_v28 }
  0xbd   : > { %416 = vadd.xlane.f32.xlu1 %v413_v29 }
 0x142   : > { %v415_v52 = vpop.xlane.xlu1 %414 }
 0x143   : > { %v418_v53 = vmul.f32 0.0078125, %v415_v52 }
 0x145   : > { %v420_v54 = vadd.f32 1e-05, %v418_v53 }
 0x146   : > { %v417_v55 = vpop.xlane.xlu1 %416 }
 0x147   : > { %2515 = vrsqrt.f32 %v420_v54  ;;  %v419_v56 = vmul.f32 0.0078125, %v417_v55 }
 0x149   : > { %v421_v57 = vadd.f32 1e-05, %v419_v56 }
 0x14b   : > { %2517 = vrsqrt.f32 %v421_v57 }
 0x154   : > { %v2516_v62 = vpop.eup %2515 }
 0x155   : > { %v424_v63 = vmul.f32 %v2516_v62, %v2724_v24 }
 0x157   : > { %v430_v4 = vmul.f32 %v429_v0, %v424_v63 }
 0x158   : > { %v2518_v2 = vpop.eup %2517 }
 0x159   : > { %v425_v3 = vmul.f32 %v2518_v2, %v2728_v28  ;;  %v436_v7 = vadd.f32 %v435_v5, %v430_v4 }
 0x15b   : > { %v431_v6 = vmul.f32 %v429_v0, %v425_v3 }
 0x15d   : > { %v437_v8 = vadd.f32 %v435_v5, %v431_v6 }
 0x15f   : > { %v438_v9 = vpack.c.bf16 %v437_v8, %v436_v7 }
 0x161   : > { %600 = vmatmul.mubr.bf16.vlgmr.msra.gmra.mxu0 %v438_v9  ;;  %2221 = vmatmul.mubr.bf16.vlgmr.msra.gmra.mxu1 %v438_v9 }
 0x162   : > { %2226 = vmatprep.mubr.msk.bf16.mxu1 %vm2600_vm0, %v2598_v20  ;;  %2250 = vmatprep.mubr.msk.bf16.mxu0 %vm2600_vm0, %v2598_v20 }
 0x221   : > { %v601_v15 = vpop.f32.mrf.mxu0  ;;  %v644_v16 = vpop.f32.mrf.mxu1 }
 0x222   : > { %v655_v21 = vadd.f32 %v654_v12, %v601_v15  ;;  %v2832_v28 = vadd.f32 %v668_v17, %v644_v16 }
 0x223   : > { %v603_v18 = vpop.f32.mrf.mxu0  ;;  %v2222_v19 = vpop.f32.mrf.mxu1 }
 0x224   : > { %v663_v22 = vadd.f32 %v662_v14, %v603_v18  ;;  %v657_v31 = vmul.f32 0.17677669, %v655_v21  ;;  %v1124_v21 = vld [vmem:[%s3080_s1] sm:$0xff] }
 0x225   : > { %v605_v23 = vpop.f32.mrf.mxu0  ;;  %v647_v24 = vpop.f32.mrf.mxu1 }
 0x226   : > { %v656_v25 = vadd.f32 %v654_v12, %v605_v23  ;;  %v2829_v26 = vadd.f32 %v668_v17, %v647_v24  ;;  %701 = vrot.lane.b32.xlu0 %v663_v22, %s2601_s21  ;;  %v719_v27 = vpack.c.bf16 %v663_v22, %v663_v22  ;;  %v691_v39 = vpack.c.bf16 %v657_v31, %v657_v31 }
 0x227   : > { %v607_v29 = vpop.f32.mrf.mxu0  ;;  %v2223_v30 = vpop.f32.mrf.mxu1 }
 0x228   : > { %v658_v32 = vmul.f32 0.17677669, %v656_v25  ;;  %v664_v33 = vadd.f32 %v662_v14, %v607_v29  ;;  %v760_v34 = vsel %vm755_vm1, %v719_v27, 0  ;;  %v2837_v35 = vpack.i.bf16 %v2829_v26, %v2832_v28 }
 0x229   : > { %2225 = vmatpush3.bf16.xpose.msra.mxu1 %v760_v34  ;;  %v747_v14 = vpack.c.bf16 %v2832_v28, %v2832_v28  ;;  %v748_v15 = vpack.c.bf16 %v2829_v26, %v2829_v26  ;;  %v1125_v28 = vld [vmem:[%s3080_s1 + $0x8] sm:$0xff] }
 0x22a   : > { %v2422_v36 = vpack.i.bf16 %v658_v32, %v657_v31  ;;  %v2412_v37 = vpack.i.bf16 %v664_v33, %v657_v31  ;;  %2230 = vmatprep.subr.bf16.mxu1 %v2598_v20  ;;  %v720_v38 = vpack.c.bf16 %v664_v33, %v664_v33  ;;  %v2417_v41 = vpack.i.bf16 %v664_v33, %v663_v22 }
 0x22b   : > { %v692_v42 = vpack.c.bf16 %v658_v32, %v658_v32  ;;  %v1236_v18 = vsel %vm1234_vm2, %v747_v14, 0  ;;  %v1282_v19 = vsel %vm1234_vm2, %v748_v15, 0 }
 0x22c   : > { %2423 = vrot.lane.b32.xlu0 %v2422_v36, %s2602_s26  ;;  %2413 = vrot.lane.b32.xlu1 %v2412_v37, %s2601_s21  ;;  %v806_v40 = vsel %vm755_vm1, %v720_v38, 0 }
 0x230   : > { %2227 = vmatmul.mubr.msk.bf16.vlgmr.msra.gmra.mxu1 %vm755_vm1, %v691_v39  ;;  %2433 = vrot.lane.b32.xlu0 %v2422_v36, %s2603_s27 }
 0x231   : > { %675 = vrot.lane.b32.xlu1 %v658_v32, %s2601_s21  ;;  %2231 = vmatpush3.bf16.xpose.msra.mxu1 %v806_v40 }
 0x232   : > { %2232 = vmatprep.mubr.msk.bf16.mxu1 %vm2600_vm0, %v2598_v20  ;;  %2236 = vmatprep.subr.bf16.mxu1 %v2598_v20 }
 0x235   : > { %2418 = vrot.lane.b32.xlu1 %v2417_v41, %s2602_s26 }
 0x238   : > { %2233 = vmatmul.mubr.msk.bf16.vlgmr.msra.gmra.mxu1 %vm755_vm1, %v692_v42 }
 0x239   : > { %2428 = vrot.lane.b32.xlu1 %v2417_v41, %s2603_s27  ;;  %2238 = vmatprep.mubr.msk.bf16.mxu1 %vm2600_vm0, %v2598_v20 }
 0x298   : > { %v702_v43 = vpop.permute.xlu0 %701 }
 0x299   : > { %v721_v44 = vpack.c.bf16 %v702_v43, %v702_v43 }
 0x29b   : > { %v852_v45 = vsel %vm755_vm1, %v721_v44, 0 }
 0x29c   : > { %2237 = vmatpush3.bf16.xpose.msra.mxu1 %v852_v45 }
 0x29d   : > { %2242 = vmatprep.subr.bf16.mxu1 %v2598_v20 }
 0x29e   : > { %v2414_v46 = vpop.permute.xlu1 %2413  ;;  %v2424_v60 = vpop.permute.xlu0 %2423 }
 0x29f   : > { %v2416_v47 = vunpack.i.h.bf16 %v2414_v46  ;;  %v2415_v48 = vunpack.i.l.bf16 %v2414_v46  ;;  %v2426_v3 = vunpack.i.h.bf16 %v2424_v60  ;;  %v2425_v4 = vunpack.i.l.bf16 %v2424_v60 }
 0x2a1   : > { %v722_v49 = vpack.c.bf16 %v2416_v47, %v2416_v47  ;;  %v693_v50 = vpack.c.bf16 %v2415_v48, %v2415_v48  ;;  %v696_v7 = vpack.c.bf16 %v2426_v3, %v2426_v3  ;;  %v695_v8 = vpack.c.bf16 %v2425_v4, %v2425_v4 }
 0x2a2   : > { %v2434_v9 = vpop.permute.xlu0 %2433 }
 0x2a3   : > { %v676_v51 = vpop.permute.xlu1 %675  ;;  %2239 = vmatmul.mubr.msk.bf16.vlgmr.msra.gmra.mxu1 %vm755_vm1, %v693_v50  ;;  %v898_v52 = vsel %vm755_vm1, %v722_v49, 0  ;;  %v2436_v12 = vunpack.i.h.bf16 %v2434_v9  ;;  %v2435_v13 = vunpack.i.l.bf16 %v2434_v9 }
 0x2a4   : > { %2243 = vmatpush3.bf16.xpose.msra.mxu1 %v898_v52  ;;  %2244 = vmatprep.mubr.msk.bf16.mxu1 %vm2600_vm0, %v2598_v20  ;;  %v694_v56 = vpack.c.bf16 %v676_v51, %v676_v51 }
 0x2a5   : > { %2254 = vmatprep.subr.bf16.mxu1 %v2598_v20  ;;  %v698_v16 = vpack.c.bf16 %v2436_v12, %v2436_v12  ;;  %v697_v17 = vpack.c.bf16 %v2435_v13, %v2435_v13 }
 0x2a7   : > { %v2419_v53 = vpop.permute.xlu1 %2418 }
 0x2a8   : > { %v2421_v54 = vunpack.i.h.bf16 %v2419_v53  ;;  %v2420_v55 = vunpack.i.l.bf16 %v2419_v53 }
 0x2aa   : > { %v724_v57 = vpack.c.bf16 %v2421_v54, %v2421_v54  ;;  %v723_v58 = vpack.c.bf16 %v2420_v55, %v2420_v55 }
 0x2ab   : > { %v2429_v62 = vpop.permute.xlu1 %2428  ;;  %2245 = vmatmul.mubr.msk.bf16.vlgmr.msra.gmra.mxu1 %vm755_vm1, %v694_v56 }
 0x2ac   : > { %v2431_v63 = vunpack.i.h.bf16 %v2429_v62  ;;  %v2430_v0 = vunpack.i.l.bf16 %v2429_v62  ;;  %v944_v1 = vsel %vm755_vm1, %v723_v58, 0  ;;  %v990_v2 = vsel %vm755_vm1, %v724_v57, 0  ;;  %2256 = vmatprep.mubr.msk.bf16.mxu1 %vm2600_vm0, %v2598_v20 }
 0x2ad   : > { %2249 = vmatpush3.bf16.xpose.msra.mxu0 %v944_v1  ;;  %2255 = vmatpush3.bf16.xpose.msra.mxu1 %v990_v2 }
 0x2ae   : > { %2260 = vmatprep.subr.bf16.mxu0 %v2598_v20  ;;  %2266 = vmatprep.subr.bf16.mxu1 %v2598_v20  ;;  %v726_v5 = vpack.c.bf16 %v2431_v63, %v2431_v63  ;;  %v725_v6 = vpack.c.bf16 %v2430_v0, %v2430_v0 }
 0x2b0   : > { %v1036_v10 = vsel %vm755_vm1, %v725_v6, 0  ;;  %v1082_v11 = vsel %vm755_vm1, %v726_v5, 0 }
 0x2b4   : > { %2251 = vmatmul.mubr.msk.bf16.vlgmr.msra.gmra.mxu0 %vm755_vm1, %v695_v8  ;;  %2257 = vmatmul.mubr.msk.bf16.vlgmr.msra.gmra.mxu1 %vm755_vm1, %v696_v7 }
 0x2b5   : > { %2261 = vmatpush3.bf16.xpose.msra.mxu0 %v1036_v10  ;;  %2267 = vmatpush3.bf16.xpose.msra.mxu1 %v1082_v11 }
 0x2b6   : > { %2262 = vmatprep.mubr.msk.bf16.mxu0 %vm2600_vm0, %v2598_v20  ;;  %2268 = vmatprep.mubr.msk.bf16.mxu1 %vm2600_vm0, %v2598_v20 }
 0x2b7   : > { %2272 = vmatprep.subr.bf16.mxu0 %v2598_v20  ;;  %2278 = vmatprep.subr.bf16.mxu1 %v2598_v20 }
 0x2bc   : > { %2263 = vmatmul.mubr.msk.bf16.vlgmr.msra.gmra.mxu0 %vm755_vm1, %v697_v17  ;;  %2269 = vmatmul.mubr.msk.bf16.vlgmr.msra.gmra.mxu1 %vm755_vm1, %v698_v16 }
 0x2bd   : > { %2273 = vmatpush3.bf16.msra.mxu0 %v1236_v18  ;;  %2279 = vmatpush3.bf16.msra.mxu1 %v1282_v19 }
 0x2be   : > { %2280 = vmatprep.mubr.msk.bf16.mxu1 %vm2600_vm0, %v2598_v20  ;;  %2290 = vmatprep.subr.bf16.mxu1 %v2598_v20 }
 0x2bf   : > { %2274 = vmatprep.mubr.msk.bf16.mxu0 %vm2600_vm0, %v2598_v20  ;;  %2284 = vmatprep.subr.bf16.mxu0 %v2598_v20 }
 0x2f0   : > { %v796_v22 = vpop.f32.mrf.mxu1 }
 0x2f1   : > { %v2895_v23 = vadd.f32 %v1124_v21, %v796_v22 }
 0x2f2   : > { %v2228_v24 = vpop.f32.mrf.mxu1 }
 0x2f3   : > { %v1135_v25 = vsel %vm1134_vm3, %v2895_v23, -inf }
 0x2f4   : > { %v799_v26 = vpop.f32.mrf.mxu1  ;;  %1136 = vmax.xlane.f32.xlu1 %v1135_v25 }
 0x2f6   : > { %v2229_v27 = vpop.f32.mrf.mxu1 }
 0x2f8   : > { %v842_v29 = vpop.f32.mrf.mxu1 }
 0x2f9   : > { %v1127_v30 = vadd.f32 %v1125_v28, %v842_v29 }
 0x2fa   : > { %v2234_v31 = vpop.f32.mrf.mxu1 }
 0x2fb   : > { %v1138_v32 = vsel %vm1134_vm3, %v1127_v30, -inf }
 0x2fc   : > { %1139 = vmax.xlane.f32.xlu0 %v1138_v32  ;;  %v845_v33 = vpop.f32.mrf.mxu1 }
 0x2fe   : > { %v2235_v34 = vpop.f32.mrf.mxu1 }
 0x363   : > { %v888_v36 = vpop.f32.mrf.mxu1 }
 0x364   : > { %v1128_v37 = vadd.f32 %v1124_v21, %v888_v36 }
 0x365   : > { %v2240_v38 = vpop.f32.mrf.mxu1 }
 0x366   : > { %v1141_v39 = vsel %vm1134_vm3, %v1128_v37, -inf }
 0x367   : > { %1142 = vmax.xlane.f32.xlu0 %v1141_v39  ;;  %v891_v40 = vpop.f32.mrf.mxu1 }
 0x369   : > { %v2241_v41 = vpop.f32.mrf.mxu1 }
 0x36b   : > { %v934_v42 = vpop.f32.mrf.mxu1 }
 0x36c   : > { %v1129_v43 = vadd.f32 %v1125_v28, %v934_v42 }
 0x36d   : > { %v2246_v44 = vpop.f32.mrf.mxu1 }
 0x36e   : > { %v1144_v45 = vsel %vm1134_vm3, %v1129_v43, -inf }
 0x36f   : > { %1145 = vmax.xlane.f32.xlu0 %v1144_v45  ;;  %v937_v46 = vpop.f32.mrf.mxu1 }
 0x371   : > { %v2247_v47 = vpop.f32.mrf.mxu1 }
 0x374   : > { %v980_v48 = vpop.f32.mrf.mxu0  ;;  %v1026_v49 = vpop.f32.mrf.mxu1 }
 0x375   : > { %v1130_v50 = vadd.f32 %v1124_v21, %v980_v48  ;;  %v1131_v51 = vadd.f32 %v1125_v28, %v1026_v49 }
 0x376   : > { %v2252_v52 = vpop.f32.mrf.mxu0  ;;  %v2258_v53 = vpop.f32.mrf.mxu1 }
 0x377   : > { %v1147_v54 = vsel %vm1134_vm3, %v1130_v50, -inf  ;;  %v1150_v55 = vsel %vm1134_vm3, %v1131_v51, -inf }
 0x378   : > { %1148 = vmax.xlane.f32.xlu1 %v1147_v54  ;;  %v983_v56 = vpop.f32.mrf.mxu0  ;;  %1151 = vmax.xlane.f32.xlu0 %v1150_v55  ;;  %v1029_v57 = vpop.f32.mrf.mxu1 }
 0x37a   : > { %v2253_v58 = vpop.f32.mrf.mxu0  ;;  %v2259_v60 = vpop.f32.mrf.mxu1 }
 0x37c   : > { %v1072_v62 = vpop.f32.mrf.mxu0  ;;  %v1118_v63 = vpop.f32.mrf.mxu1 }
 0x37d   : > { %v1132_v0 = vadd.f32 %v1124_v21, %v1072_v62  ;;  %v1133_v1 = vadd.f32 %v1125_v28, %v1118_v63  ;;  %v1137_v15 = vpop.xlane.xlu1 %1136 }
 0x37e   : > { %v2264_v2 = vpop.f32.mrf.mxu0  ;;  %v2270_v3 = vpop.f32.mrf.mxu1  ;;  %v1159_v16 = vsub.f32 %v2895_v23, %v1137_v15 }
 0x37f   : > { %v1153_v4 = vsel %vm1134_vm3, %v1132_v0, -inf  ;;  %v1156_v5 = vsel %vm1134_vm3, %v1133_v1, -inf }
 0x380   : > { %1154 = vmax.xlane.f32.xlu1 %v1153_v4  ;;  %v1075_v6 = vpop.f32.mrf.mxu0  ;;  %1157 = vmax.xlane.f32.xlu0 %v1156_v5  ;;  %v1121_v7 = vpop.f32.mrf.mxu1  ;;  %v1167_v17 = vmul.f32 1.442695, %v1159_v16 }
 0x382   : > { %v2265_v8 = vpop.f32.mrf.mxu0  ;;  %v2271_v9 = vpop.f32.mrf.mxu1 }
 0x385   : > { %v1140_v10 = vpop.xlane.xlu0 %1139 }
 0x386   : > { %v1160_v11 = vsub.f32 %v1127_v30, %v1140_v10 }
 0x388   : > { %v1169_v12 = vmul.f32 1.442695, %v1160_v11 }
 0x38a   : > { %2519 = vpow2.f32 %v1169_v12 }
 0x38b   : > { %2521 = vpow2.f32 %v1167_v17 }
 0x391   : > { %2438 = vrot.lane.b32.xlu1 %v2837_v35, %s2601_s21 }
 0x397   : > { %v2520_v13 = vpop.eup %2519 }
 0x398   : > { %v1186_v14 = vsel %vm1134_vm3, %v2520_v13, 0.0  ;;  %v2913_v18 = vpop.eup %2521 }
 0x399   : > { %1187 = vadd.xlane.f32.xlu0 %v1186_v14  ;;  %v1183_v19 = vsel %vm1134_vm3, %v2913_v18, 0.0 }
 0x3b5   : > { %1184 = vadd.xlane.f32.xlu1 %v1183_v19 }
 0x3f0   : > { %v1143_v21 = vpop.xlane.xlu0 %1142 }
 0x3f1   : > { %v1161_v22 = vsub.f32 %v1128_v37, %v1143_v21 }
 0x3f3   : > { %v1171_v24 = vmul.f32 1.442695, %v1161_v22 }
 0x3f5   : > { %2523 = vpow2.f32 %v1171_v24 }
 0x3f8   : > { %v1146_v25 = vpop.xlane.xlu0 %1145 }
 0x3f9   : > { %v1162_v26 = vsub.f32 %v1129_v43, %v1146_v25 }
 0x3fb   : > { %v1173_v27 = vmul.f32 1.442695, %v1162_v26 }
 0x3fd   : > { %2525 = vpow2.f32 %v1173_v27 }
 0x401   : > { %v1149_v28 = vpop.xlane.xlu1 %1148  ;;  %v1152_v29 = vpop.xlane.xlu0 %1151 }
 0x402   : > { %v2917_v30 = vpop.eup %2523  ;;  %v1163_v23 = vsub.f32 %v1130_v50, %v1149_v28  ;;  %v1164_v31 = vsub.f32 %v1131_v51, %v1152_v29 }
 0x403   : > { %v1189_v32 = vsel %vm1134_vm3, %v2917_v30, 0.0 }
 0x404   : > { %v1175_v33 = vmul.f32 1.442695, %v1163_v23  ;;  %v1177_v34 = vmul.f32 1.442695, %v1164_v31  ;;  %1190 = vadd.xlane.f32.xlu1 %v1189_v32 }
 0x406   : > { %2527 = vpow2.f32 %v1175_v33 }
 0x407   : > { %2529 = vpow2.f32 %v1177_v34 }
 0x409   : > { %v1155_v36 = vpop.xlane.xlu1 %1154  ;;  %v1158_v37 = vpop.xlane.xlu0 %1157 }
 0x40a   : > { %v2526_v38 = vpop.eup %2525  ;;  %v1165_v39 = vsub.f32 %v1132_v0, %v1155_v36  ;;  %v1166_v40 = vsub.f32 %v1133_v1, %v1158_v37 }
 0x40b   : > { %v1192_v41 = vsel %vm1134_vm3, %v2526_v38, 0.0 }
 0x40c   : > { %v1179_v42 = vmul.f32 1.442695, %v1165_v39  ;;  %v1181_v43 = vmul.f32 1.442695, %v1166_v40  ;;  %1193 = vadd.xlane.f32.xlu0 %v1192_v41 }
 0x40d   : > { %v2439_v53 = vpop.permute.xlu1 %2438 }
 0x40e   : > { %2531 = vpow2.f32 %v1179_v42  ;;  %v2441_v54 = vunpack.i.h.bf16 %v2439_v53  ;;  %v2440_v63 = vunpack.i.l.bf16 %v2439_v53  ;;  %v2472_v42 = vld [vmem:[%s3081_s2 + $0xec] ss:$16 sps:$4 sm:$0xff]  }
 0x40f   : > { %2533 = vpow2.f32 %v1181_v43 }
 0x410   : > { %v750_v56 = vpack.c.bf16 %v2441_v54, %v2441_v54  ;;  %v749_v1 = vpack.c.bf16 %v2440_v63, %v2440_v63 }
 0x412   : > { %v1374_v60 = vsel %vm1234_vm2, %v750_v56, 0 }
 0x413   : > { %v2922_v44 = vpop.eup %2527 }
 0x414   : > { %v2924_v45 = vpop.eup %2529  ;;  %v1195_v46 = vsel %vm1134_vm3, %v2922_v44, 0.0 }
 0x415   : > { %1196 = vadd.xlane.f32.xlu1 %v1195_v46  ;;  %v1198_v47 = vsel %vm1134_vm3, %v2924_v45, 0.0  ;;  %v2484_v46 = vld [vmem:[%s3081_s2 + $0xac] ss:$16 sps:$4 sm:$0xff]  }
 0x416   : > { %1199 = vadd.xlane.f32.xlu0 %v1198_v47  ;;  %v2490_v47 = vld [vmem:[%s3081_s2 + $0x8c] ss:$16 sps:$4 sm:$0xff]  }
 0x41b   : > { %v2930_v48 = vpop.eup %2531 }
 0x41c   : > { %v2932_v49 = vpop.eup %2533  ;;  %v1201_v50 = vsel %vm1134_vm3, %v2930_v48, 0.0 }
 0x41d   : > { %1202 = vadd.xlane.f32.xlu1 %v1201_v50  ;;  %v1204_v51 = vsel %vm1134_vm3, %v2932_v49, 0.0  ;;  %v2508_v50 = vld [vmem:[%s3081_s2 + $0x2c] ss:$16 sps:$4 sm:$0xff]  }
 0x41e   : > { %1205 = vadd.xlane.f32.xlu0 %v1204_v51  ;;  %v2514_v51 = vld [vmem:[%s3081_s2 + $0xc] ss:$16 sps:$4 sm:$0xff]  }
 0x422   : > { %v1188_v52 = vpop.xlane.xlu0 %1187 }
 0x423   : > { %2535 = vrcp.f32 %v1188_v52 }
 0x42e   : > { %2448 = vrot.lane.b32.xlu1 %v2837_v35, %s2603_s27 }
 0x430   : > { %v2536_v55 = vpop.eup %2535 }
 0x431   : > { %v1210_v57 = vmul.f32 %v2536_v55, %v2520_v13 }
 0x433   : > { %v1224_v58 = vpack.c.bf16 %v1210_v57, %v1210_v57 }
 0x434   : > { %2443 = vrot.lane.b32.xlu0 %v2837_v35, %s2602_s26  ;;  %v1328_v35 = vsel %vm1234_vm2, %v749_v1, 0 }
 0x435   : > { %2281 = vmatmul.mubr.msk.bf16.vlgmr.msra.gmra.mxu1 %vm1134_vm3, %v1224_v58 }
 0x436   : > { %2291 = vmatpush3.bf16.msra.mxu1 %v1374_v60  ;;  %2292 = vmatprep.mubr.msk.bf16.mxu1 %vm2600_vm0, %v2598_v20 }
 0x437   : > { %2302 = vmatprep.subr.bf16.mxu1 %v2598_v20 }
 0x43e   : > { %v1185_v62 = vpop.xlane.xlu1 %1184 }
 0x43f   : > { %2537 = vrcp.f32 %v1185_v62 }
 0x44c   : > { %v2538_v0 = vpop.eup %2537 }
 0x44d   : > { %v1208_v2 = vmul.f32 %v2538_v0, %v2913_v18 }
 0x44f   : > { %v1223_v3 = vpack.c.bf16 %v1208_v2, %v1208_v2 }
 0x451   : > { %2275 = vmatmul.mubr.msk.bf16.vlgmr.msra.gmra.mxu0 %vm1134_vm3, %v1223_v3 }
 0x452   : > { %2285 = vmatpush3.bf16.msra.mxu0 %v1328_v35  ;;  %2286 = vmatprep.mubr.msk.bf16.mxu0 %vm2600_vm0, %v2598_v20 }
 0x453   : > { %2296 = vmatprep.subr.bf16.mxu0 %v2598_v20 }
 0x48d   : > { %v1191_v4 = vpop.xlane.xlu1 %1190 }
 0x48e   : > { %2539 = vrcp.f32 %v1191_v4 }
 0x495   : > { %v1194_v5 = vpop.xlane.xlu0 %1193 }
 0x496   : > { %2541 = vrcp.f32 %v1194_v5 }
 0x49b   : > { %v2540_v6 = vpop.eup %2539 }
 0x49c   : > { %v1212_v7 = vmul.f32 %v2540_v6, %v2917_v30 }
 0x49e   : > { %v1197_v8 = vpop.xlane.xlu1 %1196  ;;  %v1225_v9 = vpack.c.bf16 %v1212_v7, %v1212_v7 }
 0x49f   : > { %2543 = vrcp.f32 %v1197_v8  ;;  %v1200_v10 = vpop.xlane.xlu0 %1199 }
 0x4a0   : > { %2545 = vrcp.f32 %v1200_v10  ;;  %2287 = vmatmul.mubr.msk.bf16.vlgmr.msra.gmra.mxu0 %vm1134_vm3, %v1225_v9 }
 0x4a1   : > { %2298 = vmatprep.mubr.msk.bf16.mxu0 %vm2600_vm0, %v2598_v20 }
 0x4a3   : > { %v2542_v11 = vpop.eup %2541 }
 0x4a4   : > { %v1214_v12 = vmul.f32 %v2542_v11, %v2526_v38 }
 0x4a6   : > { %v1203_v13 = vpop.xlane.xlu1 %1202  ;;  %v1226_v14 = vpack.c.bf16 %v1214_v12, %v1214_v12 }
 0x4a7   : > { %2547 = vrcp.f32 %v1203_v13  ;;  %v1206_v15 = vpop.xlane.xlu0 %1205 }
 0x4a8   : > { %2549 = vrcp.f32 %v1206_v15  ;;  %2293 = vmatmul.mubr.msk.bf16.vlgmr.msra.gmra.mxu1 %vm1134_vm3, %v1226_v14 }
 0x4a9   : > { %2304 = vmatprep.mubr.msk.bf16.mxu1 %vm2600_vm0, %v2598_v20 }
 0x4aa   : > { %v2449_v16 = vpop.permute.xlu1 %2448 }
 0x4ab   : > { %v2444_v17 = vpop.permute.xlu0 %2443  ;;  %v2451_v19 = vunpack.i.h.bf16 %v2449_v16  ;;  %v2450_v21 = vunpack.i.l.bf16 %v2449_v16 }
 0x4ac   : > { %v2544_v18 = vpop.eup %2543  ;;  %v2446_v22 = vunpack.i.h.bf16 %v2444_v17  ;;  %v2445_v24 = vunpack.i.l.bf16 %v2444_v17 }
 0x4ad   : > { %v2546_v25 = vpop.eup %2545  ;;  %v1216_v28 = vmul.f32 %v2544_v18, %v2922_v44  ;;  %v754_v30 = vpack.c.bf16 %v2451_v19, %v2451_v19  ;;  %v753_v23 = vpack.c.bf16 %v2450_v21, %v2450_v21 }
 0x4ae   : > { %v752_v26 = vpack.c.bf16 %v2446_v22, %v2446_v22  ;;  %v751_v27 = vpack.c.bf16 %v2445_v24, %v2445_v24  ;;  %v1218_v29 = vmul.f32 %v2546_v25, %v2924_v45  ;;  %v2478_v45 = vld [vmem:[%s3081_s2 + $0xcc] ss:$16 sps:$4 sm:$0xff]  }
 0x4af   : > { %v1227_v33 = vpack.c.bf16 %v1216_v28, %v1216_v28  ;;  %v1512_v37 = vsel %vm1234_vm2, %v753_v23, 0  ;;  %v1558_v38 = vsel %vm1234_vm2, %v754_v30, 0 }
 0x4b0   : > { %v1420_v31 = vsel %vm1234_vm2, %v751_v27, 0  ;;  %v1466_v32 = vsel %vm1234_vm2, %v752_v26, 0  ;;  %v1228_v34 = vpack.c.bf16 %v1218_v29, %v1218_v29 }
 0x4b1   : > { %2297 = vmatpush3.bf16.msra.mxu0 %v1420_v31  ;;  %2303 = vmatpush3.bf16.msra.mxu1 %v1466_v32 }
 0x4b2   : > { %2308 = vmatprep.subr.bf16.mxu0 %v2598_v20  ;;  %2314 = vmatprep.subr.bf16.mxu1 %v2598_v20 }
 0x4b4   : > { %v2548_v36 = vpop.eup %2547  ;;  %2299 = vmatmul.mubr.msk.bf16.vlgmr.msra.gmra.mxu0 %vm1134_vm3, %v1227_v33  ;;  %2305 = vmatmul.mubr.msk.bf16.vlgmr.msra.gmra.mxu1 %vm1134_vm3, %v1228_v34 }
 0x4b5   : > { %v2550_v39 = vpop.eup %2549  ;;  %2309 = vmatpush3.bf16.msra.mxu0 %v1512_v37  ;;  %2315 = vmatpush3.bf16.msra.mxu1 %v1558_v38  ;;  %v1220_v40 = vmul.f32 %v2548_v36, %v2930_v48  ;;  %v2496_v48 = vld [vmem:[%s3081_s2 + $0x6c] ss:$16 sps:$4 sm:$0xff]  }
 0x4b6   : > { %2310 = vmatprep.mubr.msk.bf16.mxu0 %vm2600_vm0, %v2598_v20  ;;  %2316 = vmatprep.mubr.msk.bf16.mxu1 %vm2600_vm0, %v2598_v20  ;;  %v1222_v41 = vmul.f32 %v2550_v39, %v2932_v49  ;;  %v2502_v49 = vld [vmem:[%s3081_s2 + $0x4c] ss:$16 sps:$4 sm:$0xff]  }
 0x4b7   : > { %2320 = vmatprep.subr.bf16.mxu0 %v2598_v20  ;;  %v1229_v43 = vpack.c.bf16 %v1220_v40, %v1220_v40 }
 0x4b8   : > { %v1230_v44 = vpack.c.bf16 %v1222_v41, %v1222_v41  ;;  %v1710_v41 = vsub.s32 4, %v2805_v59 }
 0x4bc   : > { %2311 = vmatmul.mubr.msk.bf16.vlgmr.msra.gmra.mxu0 %vm1134_vm3, %v1229_v43  ;;  %2317 = vmatmul.mubr.msk.bf16.vlgmr.msra.gmra.mxu1 %vm1134_vm3, %v1230_v44  ;;  %v1711_v43 = vrot.slane %v2811_v61, %v1710_v41 }
 0x4bd   : > { %2321 = vmatpush3.bf16.msra.mxu0 %v2472_v42  ;;  %2336 = vmatprep.mubr.msk.bf16.mxu0 %vm2600_vm0, %v2598_v20  ;;  %v1760_v42 = vsub.s32 5, %v2805_v59 }
 0x4be   : > { %2322 = vmatprep.subr.bf16.mxu0 %v2598_v20 }
 0x4c1   : > { %2323 = vmatpush3.bf16.msra.mxu0 %v2478_v45  ;;  %v2555_v45 = vld [vmem:[%s3079_s0] sm:$0xff] }
 0x4c2   : > { %2324 = vmatprep.subr.bf16.mxu0 %v2598_v20 }
 0x4c5   : > { %2325 = vmatpush3.bf16.msra.mxu0 %v2484_v46 }
 0x4c6   : > { %2326 = vmatprep.subr.bf16.mxu0 %v2598_v20 }
 0x4c9   : > { %2327 = vmatpush3.bf16.msra.mxu0 %v2490_v47  ;;  %v1761_v47 = vrot.slane %v2811_v61, %v1760_v42 }
 0x4ca   : > { %2328 = vmatprep.subr.bf16.mxu0 %v2598_v20 }
 0x4cd   : > { %2329 = vmatpush3.bf16.msra.mxu0 %v2496_v48 }
 0x4ce   : > { %2330 = vmatprep.subr.bf16.mxu0 %v2598_v20 }
 0x4d1   : > { %2331 = vmatpush3.bf16.msra.mxu0 %v2502_v49 }
 0x4d2   : > { %2332 = vmatprep.subr.bf16.mxu0 %v2598_v20 }
 0x4d5   : > { %2333 = vmatpush3.bf16.msra.mxu0 %v2508_v50 }
 0x4d6   : > { %2334 = vmatprep.subr.bf16.mxu0 %v2598_v20 }
 0x4d9   : > { %2335 = vmatpush3.bf16.msra.mxu0 %v2514_v51 }
 0x4f5   : > { %v1318_v52 = vpop.f32.mrf.mxu1 }
 0x4f7   : > { %v2282_v53 = vpop.f32.mrf.mxu1 }
 0x4f9   : > { %v1321_v54 = vpop.f32.mrf.mxu1 }
 0x4fb   : > { %v2283_v55 = vpop.f32.mrf.mxu1 }
 0x511   : > { %v1272_v56 = vpop.f32.mrf.mxu0 }
 0x513   : > { %v2276_v57 = vpop.f32.mrf.mxu0 }
 0x515   : > { %v1275_v58 = vpop.f32.mrf.mxu0 }
 0x517   : > { %v2277_v60 = vpop.f32.mrf.mxu0 }
 0x560   : > { %v1364_v62 = vpop.f32.mrf.mxu0 }
 0x562   : > { %v2288_v63 = vpop.f32.mrf.mxu0 }
 0x564   : > { %v1367_v0 = vpop.f32.mrf.mxu0 }
 0x566   : > { %v2289_v1 = vpop.f32.mrf.mxu0 }
 0x568   : > { %v1410_v2 = vpop.f32.mrf.mxu1 }
 0x569   : > { %v2452_v3 = vpack.i.bf16 %v1410_v2, %v1364_v62 }
 0x56a   : > { %v2294_v35 = vpop.f32.mrf.mxu1 }
 0x56b   : > { %2453 = vrot.lane.b32.xlu1 %v2452_v3, %s2603_s27 }
 0x56c   : > { %v1413_v4 = vpop.f32.mrf.mxu1 }
 0x56e   : > { %v2295_v20 = vpop.f32.mrf.mxu1 }
 0x574   : > { %v1456_v5 = vpop.f32.mrf.mxu0  ;;  %v1502_v6 = vpop.f32.mrf.mxu1 }
 0x575   : > { %v2457_v7 = vpack.i.bf16 %v1502_v6, %v1456_v5 }
 0x576   : > { %v2300_v8 = vpop.f32.mrf.mxu0  ;;  %v2306_v9 = vpop.f32.mrf.mxu1 }
 0x577   : > { %2458 = vrot.lane.b32.xlu1 %v2457_v7, %s2602_s26  ;;  %v1738_v7 = vsub.s32 2, %v2805_v59 }
 0x578   : > { %v1459_v10 = vpop.f32.mrf.mxu0  ;;  %v1505_v11 = vpop.f32.mrf.mxu1 }
 0x579   : > { %v1739_v9 = vrot.slane %v2811_v61, %v1738_v7  ;;  %v1744_v10 = vsub.s32 3, %v2805_v59 }
 0x57a   : > { %v2301_v12 = vpop.f32.mrf.mxu0  ;;  %v2307_v13 = vpop.f32.mrf.mxu1 }
 0x57b   : > { %v1745_v13 = vrot.slane %v2811_v61, %v1744_v10 }
 0x57c   : > { %v1548_v14 = vpop.f32.mrf.mxu0  ;;  %v1594_v15 = vpop.f32.mrf.mxu1 }
 0x57d   : > { %v2462_v16 = vpack.i.bf16 %v1594_v15, %v1548_v14 }
 0x57e   : > { %v2312_v17 = vpop.f32.mrf.mxu0  ;;  %v2318_v18 = vpop.f32.mrf.mxu1 }
 0x57f   : > { %2463 = vrot.lane.b32.xlu0 %v2462_v16, %s2601_s21 }
 0x580   : > { %v1551_v19 = vpop.f32.mrf.mxu0  ;;  %v1597_v21 = vpop.f32.mrf.mxu1 }
 0x582   : > { %v2313_v22 = vpop.f32.mrf.mxu0  ;;  %v2319_v24 = vpop.f32.mrf.mxu1 }
 0x5dd   : > { %v2454_v25 = vpop.permute.xlu1 %2453 }
 0x5de   : > { %v2456_v27 = vunpack.i.h.bf16 %v2454_v25  ;;  %v2455_v28 = vunpack.i.l.bf16 %v2454_v25 }
 0x5e0   : > { %v1625_v31 = vsel %vm755_vm1, %v1318_v52, %v2456_v27  ;;  %v1624_v32 = vsel %vm755_vm1, %v1272_v56, %v2455_v28  ;;  %v2556_v52 = vld [vmem:[%s3079_s0 + $0x8] sm:$0xff] }
 0x5e9   : > { %v2459_v26 = vpop.permute.xlu1 %2458 }
 0x5ea   : > { %v2461_v29 = vunpack.i.h.bf16 %v2459_v26  ;;  %v2460_v30 = vunpack.i.l.bf16 %v2459_v26 }
 0x5ec   : > { %v1628_v36 = vsel %vm1626_vm4, %v1625_v31, %v2461_v29  ;;  %v1627_v37 = vsel %vm1626_vm4, %v1624_v32, %v2460_v30 }
 0x5f1   : > { %v2464_v23 = vpop.permute.xlu0 %2463 }
 0x5f2   : > { %v2466_v33 = vunpack.i.h.bf16 %v2464_v23  ;;  %v2465_v34 = vunpack.i.l.bf16 %v2464_v23 }
 0x5f4   : > { %v1631_v38 = vsel %vm1629_vm5, %v1628_v36, %v2466_v33  ;;  %v1630_v39 = vsel %vm1629_vm5, %v1627_v37, %v2465_v34 }
 0x5f5   : > { %v1632_v40 = vpack.c.bf16 %v1631_v38, %v1630_v39 }
 0x5f7   : > { %2337 = vmatmul.mubr.bf16.vlgmr.msra.gmra.mxu0 %v1632_v40 }
 0x6b7   : > { %v1699_v44 = vpop.f32.mrf.mxu0 }
 0x6b8   : > { %v1706_v46 = vadd.f32 %v2555_v45, %v1699_v44 }
 0x6b9   : > { %v2338_v48 = vpop.f32.mrf.mxu0 }
 0x6ba   : > { %v1712_v49 = vadd.f32 %v1711_v43, %v1706_v46 }
 0x6bb   : > { %v1702_v50 = vpop.f32.mrf.mxu0 }
 0x6bc   : > { %v1762_v51 = vadd.f32 %v1761_v47, %v1712_v49  ;;  %v1707_v53 = vadd.f32 %v2556_v52, %v1702_v50  ;;  %1714 = vadd.xlane.f32.xlu1 %v1712_v49 }
 0x6bd   : > { %v2339_v54 = vpop.f32.mrf.mxu0 }
 0x6be   : > { %1764 = vst [vmem:[%s3085_s6] sm:$0xff] %v1762_v51  ;;  %v1713_v55 = vadd.f32 %v1711_v43, %v1707_v53 }
 0x6c0   : > { %v1763_v56 = vadd.f32 %v1761_v47, %v1713_v55  ;;  %1716 = vadd.xlane.f32.xlu0 %v1713_v55 }
 0x6c2   : > { %1765 = vst [vmem:[%s3085_s6 + $0x8] sm:$0xff] %v1763_v56 }
 0x745   : > { %v1715_v57 = vpop.xlane.xlu1 %1714 }
 0x746   : > { %v1718_v58 = vmul.f32 0.0078125, %v1715_v57 }
 0x748   : > { %v1720_v60 = vsub.f32 %v1712_v49, %v1718_v58 }
 0x749   : > { %v1717_v62 = vpop.xlane.xlu0 %1716 }
 0x74a   : > { %v1719_v63 = vmul.f32 0.0078125, %v1717_v62  ;;  %v1722_v0 = vmul.f32 %v1720_v60, %v1720_v60 }
 0x74c   : > { %v1721_v1 = vsub.f32 %v1713_v55, %v1719_v63  ;;  %1724 = vadd.xlane.f32.xlu0 %v1722_v0 }
 0x74e   : > { %v1723_v2 = vmul.f32 %v1721_v1, %v1721_v1 }
 0x750   : > { %1726 = vadd.xlane.f32.xlu0 %v1723_v2 }
 0x7d5   : > { %v1725_v3 = vpop.xlane.xlu0 %1724 }
 0x7d6   : > { %v1728_v35 = vmul.f32 0.0078125, %v1725_v3 }
 0x7d8   : > { %v1730_v4 = vadd.f32 1e-05, %v1728_v35 }
 0x7d9   : > { %v1727_v20 = vpop.xlane.xlu0 %1726 }
 0x7da   : > { %2551 = vrsqrt.f32 %v1730_v4  ;;  %v1729_v5 = vmul.f32 0.0078125, %v1727_v20 }
 0x7dc   : > { %v1731_v6 = vadd.f32 1e-05, %v1729_v5 }
 0x7de   : > { %2553 = vrsqrt.f32 %v1731_v6 }
 0x7e7   : > { %v2552_v8 = vpop.eup %2551 }
 0x7e8   : > { %v1734_v11 = vmul.f32 %v2552_v8, %v1720_v60 }
 0x7ea   : > { %v1740_v14 = vmul.f32 %v1739_v9, %v1734_v11 }
 0x7eb   : > { %v2554_v12 = vpop.eup %2553 }
 0x7ec   : > { %v1735_v15 = vmul.f32 %v2554_v12, %v1721_v1  ;;  %v1746_v17 = vadd.f32 %v1745_v13, %v1740_v14 }
 0x7ee   : > { %v1741_v16 = vmul.f32 %v1739_v9, %v1735_v15 }
 0x7f0   : > { %v1747_v18 = vadd.f32 %v1745_v13, %v1741_v16 }
 0x7f2   : > { %v2134_v19 = vpack.c.bf16 %v1747_v18, %v1746_v17 }
 0x7f4   : > { %2135 = vst [vmem:[#allocation2] sm:$0xff] %v2134_v19  }
 0x7f5 PF: > { %v2557_v21 = vld [vmem:[%s2704_s19 + $0x38] sm:$0xff]   ;;  %v2604_v22 = vmov 0.0   ;;  %v2558_v59 = vld [vmem:[%s2704_s19 + $0x30] sm:$0xff]   ;;  %vm2605_vm6 = vmmov 0   ;;  %v2559_v61 = vld [vmem:[%s2704_s19 + $0x28] sm:$0xff]   ;;  %s2025_s17 = scalar_lea.vmem %s3082_s3, %s2657_s24 }
 0x7f6   : > { %2340 = vmatprep.subr.bf16.mxu0 %v2604_v22  ;;  %2360 = vmatprep.subr.bf16.mxu1 %v2604_v22  ;;  %v2566_v24 = vld [vmem:[%s2702_s18 + $0x38] sm:$0xff]   ;;  %v2560_v25 = vld [vmem:[%s2704_s19 + $0x20] sm:$0xff]   ;;  %v2567_v26 = vld [vmem:[%s2702_s18 + $0x30] sm:$0xff]  }
 0x7f7   : > { %2341 = vmatpush3.bf16.msra.mxu0 %v2557_v21  ;;  %2356 = vmatprep.mubr.msk.bf16.mxu0 %vm2605_vm6, %v2604_v22  ;;  %v2561_v27 = vld [vmem:[%s2704_s19 + $0x18] sm:$0xff]   ;;  %v2568_v28 = vld [vmem:[%s2702_s18 + $0x28] sm:$0xff]   ;;  %v2562_v29 = vld [vmem:[%s2704_s19 + $0x10] sm:$0xff]  }
 0x7f8   : > { %2342 = vmatprep.subr.bf16.mxu0 %v2604_v22  ;;  %2376 = vmatprep.mubr.msk.bf16.mxu1 %vm2605_vm6, %v2604_v22  ;;  %v2569_v30 = vld [vmem:[%s2702_s18 + $0x20] sm:$0xff]   ;;  %v2563_v23 = vld [vmem:[%s2704_s19 + $0x8] sm:$0xff]   ;;  %v2570_v31 = vld [vmem:[%s2702_s18 + $0x18] sm:$0xff]  }
 0x7f9   : > { %2361 = vmatpush3.bf16.msra.mxu1 %v2566_v24  ;;  %v2564_v32 = vld [vmem:[%s2704_s19] sm:$0xff]   ;;  %v2571_v34 = vld [vmem:[%s2702_s18 + $0x10] sm:$0xff]   ;;  %v2573_v37 = vld [vmem:[%s2702_s18] sm:$0xff]  }
 0x7fa   : > { %2362 = vmatprep.subr.bf16.mxu1 %v2604_v22  ;;  %v2572_v36 = vld [vmem:[%s2702_s18 + $0x8] sm:$0xff]   ;;  %v1889_v48 = vld [vmem:[%s3085_s6] sm:$0xff] }
 0x7fb   : > { %2343 = vmatpush3.bf16.msra.mxu0 %v2558_v59  ;;  %v2565_v33 = vld [vmem:[#allocation2] sm:$0xff]   ;;  %v2109_v38 = vld [vmem:[%s2025_s17 + $0x9] ss:$0 sm:$0xff] }
 0x7fc   : > { %2344 = vmatprep.subr.bf16.mxu0 %v2604_v22  ;;  %v1890_v52 = vld [vmem:[%s3085_s6 + $0x8] sm:$0xff] }
 0x7fd   : > { %2363 = vmatpush3.bf16.msra.mxu1 %v2567_v26 }
 0x7fe   : > { %2364 = vmatprep.subr.bf16.mxu1 %v2604_v22 }
 0x7ff   : > { %2345 = vmatpush3.bf16.msra.mxu0 %v2559_v61 }
 0x800   : > { %2346 = vmatprep.subr.bf16.mxu0 %v2604_v22 }
 0x801   : > { %2365 = vmatpush3.bf16.msra.mxu1 %v2568_v28 }
 0x802   : > { %2366 = vmatprep.subr.bf16.mxu1 %v2604_v22 }
 0x803   : > { %2347 = vmatpush3.bf16.msra.mxu0 %v2560_v25 }
 0x804   : > { %2348 = vmatprep.subr.bf16.mxu0 %v2604_v22 }
 0x805   : > { %2367 = vmatpush3.bf16.msra.mxu1 %v2569_v30 }
 0x806   : > { %2368 = vmatprep.subr.bf16.mxu1 %v2604_v22 }
 0x807   : > { %2349 = vmatpush3.bf16.msra.mxu0 %v2561_v27 }
 0x808   : > { %2350 = vmatprep.subr.bf16.mxu0 %v2604_v22 }
 0x809   : > { %2369 = vmatpush3.bf16.msra.mxu1 %v2570_v31 }
 0x80a   : > { %2370 = vmatprep.subr.bf16.mxu1 %v2604_v22 }
 0x80b   : > { %2351 = vmatpush3.bf16.msra.mxu0 %v2562_v29 }
 0x80c   : > { %2352 = vmatprep.subr.bf16.mxu0 %v2604_v22 }
 0x80d   : > { %2371 = vmatpush3.bf16.msra.mxu1 %v2571_v34 }
 0x80e   : > { %2372 = vmatprep.subr.bf16.mxu1 %v2604_v22 }
 0x80f   : > { %2353 = vmatpush3.bf16.msra.mxu0 %v2563_v23 }
 0x810   : > { %2354 = vmatprep.subr.bf16.mxu0 %v2604_v22 }
 0x811   : > { %2373 = vmatpush3.bf16.msra.mxu1 %v2572_v36 }
 0x812   : > { %2374 = vmatprep.subr.bf16.mxu1 %v2604_v22 }
 0x813   : > { %2355 = vmatpush3.bf16.msra.mxu0 %v2564_v32 }
 0x815   : > { %2375 = vmatpush3.bf16.msra.mxu1 %v2573_v37 }
 0x816   : > { %2357 = vmatmul.mubr.bf16.vlgmr.msra.gmra.mxu0 %v2565_v33 }
 0x8d6   : > { %v1879_v39 = vpop.f32.mrf.mxu0 }
 0x8d7   : > { %v1880_v41 = vadd.f32 %v2109_v38, %v1879_v39 }
 0x8d8   : > { %v2358_v40 = vpop.f32.mrf.mxu0 }
 0x8d9   : > { %v1886_v45 = vmax.f32 %v1880_v41, 0.0 }
 0x8da   : > { %v1882_v42 = vpop.f32.mrf.mxu0 }
 0x8db   : > { %v1883_v43 = vadd.f32 %v2109_v38, %v1882_v42 }
 0x8dc   : > { %v2359_v44 = vpop.f32.mrf.mxu0 }
 0x8dd   : > { %v1887_v46 = vmax.f32 %v1883_v43, 0.0 }
 0x8df   : > { %v1888_v47 = vpack.c.bf16 %v1887_v46, %v1886_v45 }
 0x8e1   : > { %2377 = vmatmul.mubr.bf16.vlgmr.msra.gmra.mxu1 %v1888_v47 }
 0x9a1   : > { %v1989_v49 = vpop.f32.mrf.mxu1 }
 0x9a2   : > { %v1996_v50 = vadd.f32 %v1989_v49, %v1889_v48 }
 0x9a3   : > { %v2378_v51 = vpop.f32.mrf.mxu1 }
 0x9a4   : > { %1998 = vst [vmem:[%s3085_s6] sm:$0xff] %v1996_v50 }
 0x9a5   : > { %v1992_v53 = vpop.f32.mrf.mxu1 }
 0x9a6   : > { %v1997_v54 = vadd.f32 %v1992_v53, %v1890_v52 }
 0x9a7   : > { %v2379_v55 = vpop.f32.mrf.mxu1 }
 0x9a8   : > { %1999 = vst [vmem:[%s3085_s6 + $0x8] sm:$0xff] %v1997_v54 }
 0x9a9 PF: > { %p13_p10 = scmp.ge.s32.totalorder %s2660_s25, 4   ;;  %s3086_s21 = smov %s2592_s22 }
 0x9aa   : > { %s3087_s22 = smov %s2669_s28  ;;  %s3088_s23 = smov %s2660_s25 }
 0x9ab   :  { %15 = sbr.rel (!%p13_p10) target bundleno = 2 (0x2), region = 124 }

</bundles_post_ra>
